<compile_context>
chip_gen: v5e
topology: v5e:2x2
jax: 0.10.0
libtpu: 0.0.40
codegen_flags: <defaults>
</compile_context>

<pallas_src>
import numpy as np
import jax
import jax.numpy as jnp
from jax import lax
from jax.experimental import pallas as pl
from jax.experimental.pallas import tpu as pltpu

EPS = 1e-5


# --------------------------------------------------------------------------
# Fused kernel: conv1 + bias -> BN stats + finalize -> BN + ReLU -> conv2
#               + bias -> ReLU -> + ReLU(x) -> ReLU
# --------------------------------------------------------------------------
def fused_identity_block_kernel(xs_ref, w1_ref, b1_ref, g_ref, gamma_ref,
                                beta_ref, w2_ref, b2_ref, out_ref, h_ref):
    # xs_ref   : (M, L1)    zero-padded packed input, samples stacked on rows
    #                       (M = N*(H+2), L1 = (W+2)*C, lane = w*C + c)
    # w1_ref   : (3, L1, L1) banded conv1 matrices (zero halo output columns)
    # b1_ref   : (1, L1)     conv1 bias, zero on halo lanes
    # g_ref    : (L1, L1)    0/1 channel-group-sum matrix (zero halo rows/cols)
    # gamma/beta_ref : (1, L1) BN affine params broadcast to lanes, zero halo
    # w2_ref   : (3, L1, L2) banded conv2 matrices (L2 = W*C)
    # b2_ref   : (1, L2)
    # out_ref  : (N, H, L2)
    # h_ref    : (M, L1)     VMEM scratch: padded BN+ReLU activation
    M, L1 = xs_ref.shape
    N, H, L2 = out_ref.shape
    C = (L1 - L2) // 2
    W = L2 // C
    Hp2 = H + 2
    inv_cnt = 1.0 / float(N * H * W)

    xs = xs_ref[...]

    # ---- conv1 + bias: 3 banded tap matmuls over the whole stacked batch ----
    acc1 = jnp.dot(xs[0:M - 2], w1_ref[0], preferred_element_type=jnp.float32)
    acc1 = acc1 + jnp.dot(xs[1:M - 1], w1_ref[1],
                          preferred_element_type=jnp.float32)
    acc1 = acc1 + jnp.dot(xs[2:M], w1_ref[2],
                          preferred_element_type=jnp.float32)

    # Row q of acc1 is stacked padded row q+1; rows with (q+1) % (H+2) in
    # {0, H+1} are per-sample halos / cross-sample garbage -> zero them.
    # (Halo LANES are already zero via w1m's zero columns and b1's zero lanes.)
    ridx = lax.broadcasted_iota(jnp.int32, (M - 2, L1), 0) + 1
    rmod = ridx % Hp2
    interior_row = (rmod >= 1) & (rmod <= H)
    y1 = jnp.where(interior_row, acc1 + b1_ref[...], 0.0)       # (M-2, L1)

    # ---- BatchNorm batch statistics, finalized in-kernel ----
    rsum1 = jnp.sum(y1, axis=0, keepdims=True)                  # (1, L1)
    rsum2 = jnp.sum(y1 * y1, axis=0, keepdims=True)
    s1 = jnp.dot(rsum1, g_ref[...], preferred_element_type=jnp.float32,
                 precision=lax.Precision.HIGHEST)               # per-channel sums on lanes
    s2 = jnp.dot(rsum2, g_ref[...], preferred_element_type=jnp.float32,
                 precision=lax.Precision.HIGHEST)
    mean = s1 * inv_cnt
    var = jnp.maximum(s2 * inv_cnt - mean * mean, 0.0)          # biased variance
    scale = gamma_ref[...] * lax.rsqrt(var + EPS)               # 0 on halo lanes
    shift = beta_ref[...] - mean * scale                        # 0 on halo lanes

    # ---- BN + ReLU, direct ref stores into a zero-halo padded scratch ----
    h_in = jnp.where(interior_row,
                     jnp.maximum(y1 * scale + shift, 0.0), 0.0)
    zrow = jnp.zeros((1, L1), jnp.float32)
    h_ref[0:1, :] = zrow
    h_ref[M - 1:M, :] = zrow
    h_ref[1:M - 1, :] = h_in

    # ---- conv2 + bias + ReLU + residual ReLU(x) + final ReLU ----
    acc2 = jnp.dot(h_ref[0:M - 2], w2_ref[0],
                   preferred_element_type=jnp.float32)
    acc2 = acc2 + jnp.dot(h_ref[1:M - 1], w2_ref[1],
                          preferred_element_type=jnp.float32)
    acc2 = acc2 + jnp.dot(h_ref[2:M], w2_ref[2],
                          preferred_element_type=jnp.float32)
    y2 = jnp.maximum(acc2 + b2_ref[...], 0.0)                   # (M-2, L2)

    # Residual: interior lanes/rows of the padded input, row-aligned with y2.
    res = jnp.maximum(xs[1:M - 1, C:(W + 1) * C], 0.0)
    final = jnp.maximum(y2 + res, 0.0)                          # (M-2, L2)

    for n in range(N):                                          # static unroll
        out_ref[n] = final[n * Hp2: n * Hp2 + H]


# --------------------------------------------------------------------------
# Wrapper helpers
# --------------------------------------------------------------------------
def _conv_band_matrices(w_oihw, W, pad_out):
    """Fold the kx taps and Cin->Cout mixing of a 3x3 conv into banded matrices
    over the packed (w*C + c) lane axis.  Returns (3, (W+2)*Cin, Lout) where
    Lout = (W+2)*Cout (zero halo columns) if pad_out else W*Cout."""
    Cout, Cin, KH, KW = w_oihw.shape
    Win = W + 2
    Wout = W + 2 if pad_out else W
    T = np.zeros((KW, Win, Wout), np.float32)                   # static 0/1 placement
    for kx in range(KW):
        for wi in range(W):                                     # real output pixel
            wop = wi + 1 if pad_out else wi
            T[kx, wi + kx, wop] = 1.0                           # padded input pixel
    w_t = jnp.transpose(w_oihw, (2, 3, 1, 0)).astype(jnp.float32)  # (ky,kx,ci,co)
    mat = jnp.einsum('xab,yxio->yaibo', jnp.asarray(T), w_t)
    return mat.reshape(KH, Win * Cin, Wout * Cout)


@jax.jit
def identity_block(x_nchw, w1, b1, gamma, beta, w2, b2):
    """x_nchw: (N, C, H, W); w*: PyTorch layout (Cout, Cin, 3, 3)."""
    N, Cin, H, W = x_nchw.shape
    Cout = w1.shape[0]
    assert Cin == Cout, "IdentityBlock requires in_channels == out_channels"
    C = Cin
    L1 = (W + 2) * C            # padded packed lane width
    L2 = W * C                  # dense packed lane width
    M = N * (H + 2)             # all samples stacked on rows (with H halos)

    x_nhwc = jnp.transpose(x_nchw, (0, 2, 3, 1)).astype(jnp.float32)
    xs = jnp.pad(x_nhwc, ((0, 0), (1, 1), (1, 1), (0, 0))).reshape(M, L1)

    w1m = _conv_band_matrices(w1, W, pad_out=True)              # (3, L1, L1)
    w2m = _conv_band_matrices(w2, W, pad_out=False)             # (3, L1, L2)

    interior = np.zeros((W + 2, 1), np.float32)
    interior[1:W + 1] = 1.0
    interior = jnp.asarray(interior)
    b1v = (interior * b1.astype(jnp.float32)[None, :]).reshape(1, L1)
    gammav = (interior * gamma.astype(jnp.float32)[None, :]).reshape(1, L1)
    betav = (interior * beta.astype(jnp.float32)[None, :]).reshape(1, L1)
    b2v = jnp.broadcast_to(b2.astype(jnp.float32)[None, :], (W, C)).reshape(1, L2)

    # Channel-group-sum matrix: G[l, l'] = 1 iff both lanes are interior and
    # carry the same channel.  rowsum @ G = per-channel totals broadcast back
    # onto the packed lane axis (zero on halo lanes).
    lane = np.arange(L1)
    ch = lane % C
    inner = (lane // C >= 1) & (lane // C <= W)
    g = jnp.asarray(((ch[:, None] == ch[None, :])
                     & inner[:, None] & inner[None, :]).astype(np.float32))

    def full(shape):
        return pl.BlockSpec(shape, lambda i: (0,) * len(shape))

    out_packed = pl.pallas_call(
        fused_identity_block_kernel,
        grid=(1,),
        in_specs=[full((M, L1)), full((3, L1, L1)), full((1, L1)),
                  full((L1, L1)), full((1, L1)), full((1, L1)),
                  full((3, L1, L2)), full((1, L2))],
        out_specs=full((N, H, L2)),
        out_shape=jax.ShapeDtypeStruct((N, H, L2), jnp.float32),
        scratch_shapes=[pltpu.VMEM((M, L1), jnp.float32)],
        compiler_params=pltpu.CompilerParams(
            dimension_semantics=("arbitrary",)),
    )(xs, w1m, b1v, g, gammav, betav, w2m, b2v)

    return out_packed.reshape(N, H, W, C).transpose(0, 3, 1, 2)  # back to NCHW


# --------------------------------------------------------------------------
# Pure-JAX reference mirroring the PyTorch forward (training-mode BN)
# --------------------------------------------------------------------------
def reference(x, w1, b1, gamma, beta, w2, b2):
    dn = ('NCHW', 'OIHW', 'NCHW')
    y = lax.conv_general_dilated(x, w1, (1, 1), ((1, 1), (1, 1)),
                                 dimension_numbers=dn) + b1[None, :, None, None]
    mean = jnp.mean(y, axis=(0, 2, 3), keepdims=True)
    var = jnp.mean((y - mean) ** 2, axis=(0, 2, 3), keepdims=True)
    y = (y - mean) * lax.rsqrt(var + EPS) * gamma[None, :, None, None] \
        + beta[None, :, None, None]
    y = jnp.maximum(y, 0.0)
    y = lax.conv_general_dilated(y, w2, (1, 1), ((1, 1), (1, 1)),
                                 dimension_numbers=dn) + b2[None, :, None, None]
    y = jnp.maximum(y, 0.0)
    y = jnp.maximum(y + jnp.maximum(x, 0.0), 0.0)
    return y


if __name__ == "__main__":
    N, C, H, W = 2, 4, 16, 16          # in_channels == out_channels == 4
    key = jax.random.PRNGKey(0)
    kx, k1, k2, k3, k4, k5, k6 = jax.random.split(key, 7)

    x = jax.random.normal(kx, (N, C, H, W), dtype=jnp.float32)
    w1 = jax.random.normal(k1, (C, C, 3, 3), dtype=jnp.float32) * 0.1
    b1 = jax.random.normal(k2, (C,), dtype=jnp.float32) * 0.1
    gamma = 1.0 + 0.1 * jax.random.normal(k3, (C,), dtype=jnp.float32)
    beta = 0.1 * jax.random.normal(k4, (C,), dtype=jnp.float32)
    w2 = jax.random.normal(k5, (C, C, 3, 3), dtype=jnp.float32) * 0.1
    b2 = jax.random.normal(k6, (C,), dtype=jnp.float32) * 0.1

    out = jax.block_until_ready(identity_block(x, w1, b1, gamma, beta, w2, b2))
    ref = jax.block_until_ready(reference(x, w1, b1, gamma, beta, w2, b2))

    assert out.shape == (N, C, H, W)
    err = jnp.max(jnp.abs(out - ref))
    assert jnp.allclose(out, ref, atol=1e-4, rtol=1e-4), f"max abs err {err}"
    print("KERNEL_OK")
</pallas_src>

<mosaic_0001>
module attributes {stable_mosaic.version = 11 : i64} {
  func.func @fused_identity_block_kernel(%arg0: i32, %arg1: memref<36x72xf32, #tpu.memory_space<vmem>>, %arg2: memref<3x72x72xf32, #tpu.memory_space<vmem>>, %arg3: memref<1x72xf32, #tpu.memory_space<vmem>>, %arg4: memref<72x72xf32, #tpu.memory_space<vmem>>, %arg5: memref<1x72xf32, #tpu.memory_space<vmem>>, %arg6: memref<1x72xf32, #tpu.memory_space<vmem>>, %arg7: memref<3x72x64xf32, #tpu.memory_space<vmem>>, %arg8: memref<1x64xf32, #tpu.memory_space<vmem>>, %arg9: memref<2x16x64xf32, #tpu.memory_space<vmem>>, %arg10: memref<36x72xf32, #tpu.memory_space<vmem>>) attributes {dimension_semantics = [#tpu.dimension_semantics<arbitrary>], iteration_bounds = array<i64: 1>, scalar_prefetch = 0 : i64, scratch_operands = 1 : i64, tpu.core_type = #tpu.core_type<tc>, window_params = [{pipeline_mode = #tpu.pipeline_mode<synchronous>, transform_indices = @transform_0, window_bounds = array<i64: 36, 72>}, {pipeline_mode = #tpu.pipeline_mode<synchronous>, transform_indices = @transform_1, window_bounds = array<i64: 3, 72, 72>}, {pipeline_mode = #tpu.pipeline_mode<synchronous>, transform_indices = @transform_2, window_bounds = array<i64: 1, 72>}, {pipeline_mode = #tpu.pipeline_mode<synchronous>, transform_indices = @transform_3, window_bounds = array<i64: 72, 72>}, {pipeline_mode = #tpu.pipeline_mode<synchronous>, transform_indices = @transform_4, window_bounds = array<i64: 1, 72>}, {pipeline_mode = #tpu.pipeline_mode<synchronous>, transform_indices = @transform_5, window_bounds = array<i64: 1, 72>}, {pipeline_mode = #tpu.pipeline_mode<synchronous>, transform_indices = @transform_6, window_bounds = array<i64: 3, 72, 64>}, {pipeline_mode = #tpu.pipeline_mode<synchronous>, transform_indices = @transform_7, window_bounds = array<i64: 1, 64>}, {pipeline_mode = #tpu.pipeline_mode<synchronous>, transform_indices = @transform_8, window_bounds = array<i64: 2, 16, 64>}]} {
    %c0 = arith.constant 0 : index
    %c0_0 = arith.constant 0 : index
    %0 = vector.load %arg1[%c0, %c0_0] : memref<36x72xf32, #tpu.memory_space<vmem>>, vector<36x72xf32>
    %1 = vector.extract_strided_slice %0 {offsets = [0, 0], sizes = [34, 72], strides = [1, 1]} : vector<36x72xf32> to vector<34x72xf32>
    %c0_1 = arith.constant 0 : index
    %c0_2 = arith.constant 0 : index
    %c0_3 = arith.constant 0 : index
    %2 = vector.load %arg2[%c0_1, %c0_2, %c0_3] : memref<3x72x72xf32, #tpu.memory_space<vmem>>, vector<1x72x72xf32>
    %3 = vector.shape_cast %2 : vector<1x72x72xf32> to vector<72x72xf32>
    %cst = arith.constant dense<0.000000e+00> : vector<34x72xf32>
    %4 = tpu.matmul %1, %3, %cst {dimension_numbers = #tpu.dot_dimension_numbers<[1], [0], [0], [1], [0, 0, 1, 1], [], []>} : vector<34x72xf32>, vector<72x72xf32>, vector<34x72xf32> -> vector<34x72xf32>
    %5 = vector.extract_strided_slice %0 {offsets = [1, 0], sizes = [34, 72], strides = [1, 1]} : vector<36x72xf32> to vector<34x72xf32>
    %c1 = arith.constant 1 : index
    %c0_4 = arith.constant 0 : index
    %c0_5 = arith.constant 0 : index
    %6 = vector.load %arg2[%c1, %c0_4, %c0_5] : memref<3x72x72xf32, #tpu.memory_space<vmem>>, vector<1x72x72xf32>
    %7 = vector.shape_cast %6 : vector<1x72x72xf32> to vector<72x72xf32>
    %cst_6 = arith.constant dense<0.000000e+00> : vector<34x72xf32>
    %8 = tpu.matmul %5, %7, %cst_6 {dimension_numbers = #tpu.dot_dimension_numbers<[1], [0], [0], [1], [0, 0, 1, 1], [], []>} : vector<34x72xf32>, vector<72x72xf32>, vector<34x72xf32> -> vector<34x72xf32>
    %9 = arith.addf %4, %8 : vector<34x72xf32>
    %10 = vector.extract_strided_slice %0 {offsets = [2, 0], sizes = [34, 72], strides = [1, 1]} : vector<36x72xf32> to vector<34x72xf32>
    %c2 = arith.constant 2 : index
    %c0_7 = arith.constant 0 : index
    %c0_8 = arith.constant 0 : index
    %11 = vector.load %arg2[%c2, %c0_7, %c0_8] : memref<3x72x72xf32, #tpu.memory_space<vmem>>, vector<1x72x72xf32>
    %12 = vector.shape_cast %11 : vector<1x72x72xf32> to vector<72x72xf32>
    %cst_9 = arith.constant dense<0.000000e+00> : vector<34x72xf32>
    %13 = tpu.matmul %10, %12, %cst_9 {dimension_numbers = #tpu.dot_dimension_numbers<[1], [0], [0], [1], [0, 0, 1, 1], [], []>} : vector<34x72xf32>, vector<72x72xf32>, vector<34x72xf32> -> vector<34x72xf32>
    %14 = arith.addf %9, %13 : vector<34x72xf32>
    %15 = tpu.iota {dimensions = array<i32: 0>} : vector<34x72xi32>
    %c1_i32 = arith.constant 1 : i32
    %16 = vector.broadcast %c1_i32 : i32 to vector<34x72xi32>
    %17 = arith.addi %15, %16 : vector<34x72xi32>
    %c18_i32 = arith.constant 18 : i32
    %c0_i32 = arith.constant 0 : i32
    %18 = arith.cmpi eq, %c18_i32, %c0_i32 : i32
    %c1_i32_10 = arith.constant 1 : i32
    %19 = arith.select %18, %c1_i32_10, %c18_i32 : i32
    %20 = vector.broadcast %19 : i32 to vector<34x72xi32>
    %21 = arith.remsi %17, %20 : vector<34x72xi32>
    %c0_i32_11 = arith.constant 0 : i32
    %22 = vector.broadcast %c0_i32_11 : i32 to vector<34x72xi32>
    %23 = arith.cmpi ne, %21, %22 : vector<34x72xi32>
    %c0_i32_12 = arith.constant 0 : i32
    %24 = vector.broadcast %c0_i32_12 : i32 to vector<34x72xi32>
    %25 = arith.cmpi slt, %21, %24 : vector<34x72xi32>
    %c0_i32_13 = arith.constant 0 : i32
    %26 = arith.cmpi slt, %19, %c0_i32_13 : i32
    %27 = vector.broadcast %26 : i1 to vector<34x72xi1>
    %28 = vector.broadcast %27 : vector<34x72xi1> to vector<34x72xi1>
    %29 = arith.xori %25, %28 : vector<34x72xi1>
    %30 = arith.andi %29, %23 : vector<34x72xi1>
    %31 = vector.broadcast %19 : i32 to vector<34x72xi32>
    %32 = arith.addi %21, %31 : vector<34x72xi32>
    %33 = arith.select %30, %32, %21 : vector<34x72xi1>, vector<34x72xi32>
    %c1_i32_14 = arith.constant 1 : i32
    %34 = vector.broadcast %c1_i32_14 : i32 to vector<34x72xi32>
    %35 = arith.cmpi sge, %33, %34 : vector<34x72xi32>
    %c16_i32 = arith.constant 16 : i32
    %36 = vector.broadcast %c16_i32 : i32 to vector<34x72xi32>
    %37 = arith.cmpi sle, %33, %36 : vector<34x72xi32>
    %38 = arith.andi %35, %37 : vector<34x72xi1>
    %c0_15 = arith.constant 0 : index
    %c0_16 = arith.constant 0 : index
    %39 = vector.load %arg3[%c0_15, %c0_16] : memref<1x72xf32, #tpu.memory_space<vmem>>, vector<1x72xf32>
    %40 = vector.broadcast %39 : vector<1x72xf32> to vector<34x72xf32>
    %41 = arith.addf %14, %40 : vector<34x72xf32>
    %cst_17 = arith.constant 0.000000e+00 : f32
    %42 = vector.broadcast %cst_17 : f32 to vector<34x72xf32>
    %43 = arith.select %38, %41, %42 : vector<34x72xi1>, vector<34x72xf32>
    %cst_18 = arith.constant dense<0.000000e+00> : vector<72xf32>
    %44 = vector.multi_reduction <add>, %43, %cst_18 [0] : vector<34x72xf32> to vector<72xf32>
    %45 = vector.shape_cast %44 : vector<72xf32> to vector<1x72xf32>
    %46 = arith.mulf %43, %43 : vector<34x72xf32>
    %cst_19 = arith.constant dense<0.000000e+00> : vector<72xf32>
    %47 = vector.multi_reduction <add>, %46, %cst_19 [0] : vector<34x72xf32> to vector<72xf32>
    %48 = vector.shape_cast %47 : vector<72xf32> to vector<1x72xf32>
    %c0_20 = arith.constant 0 : index
    %c0_21 = arith.constant 0 : index
    %49 = vector.load %arg4[%c0_20, %c0_21] : memref<72x72xf32, #tpu.memory_space<vmem>>, vector<72x72xf32>
    %cst_22 = arith.constant dense<0.000000e+00> : vector<1x72xf32>
    %50 = tpu.matmul %45, %49, %cst_22 {dimension_numbers = #tpu.dot_dimension_numbers<[1], [0], [0], [1], [0, 0, 1, 1], [], []>, precision = #tpu.contract_precision<fp32>} : vector<1x72xf32>, vector<72x72xf32>, vector<1x72xf32> -> vector<1x72xf32>
    %c0_23 = arith.constant 0 : index
    %c0_24 = arith.constant 0 : index
    %51 = vector.load %arg4[%c0_23, %c0_24] : memref<72x72xf32, #tpu.memory_space<vmem>>, vector<72x72xf32>
    %cst_25 = arith.constant dense<0.000000e+00> : vector<1x72xf32>
    %52 = tpu.matmul %48, %51, %cst_25 {dimension_numbers = #tpu.dot_dimension_numbers<[1], [0], [0], [1], [0, 0, 1, 1], [], []>, precision = #tpu.contract_precision<fp32>} : vector<1x72xf32>, vector<72x72xf32>, vector<1x72xf32> -> vector<1x72xf32>
    %cst_26 = arith.constant 0.001953125 : f32
    %53 = vector.broadcast %cst_26 : f32 to vector<1x72xf32>
    %54 = arith.mulf %50, %53 : vector<1x72xf32>
    %cst_27 = arith.constant 0.001953125 : f32
    %55 = vector.broadcast %cst_27 : f32 to vector<1x72xf32>
    %56 = arith.mulf %52, %55 : vector<1x72xf32>
    %57 = arith.mulf %54, %54 : vector<1x72xf32>
    %58 = arith.subf %56, %57 : vector<1x72xf32>
    %cst_28 = arith.constant 0.000000e+00 : f32
    %59 = vector.broadcast %cst_28 : f32 to vector<1x72xf32>
    %60 = arith.maximumf %58, %59 : vector<1x72xf32>
    %c0_29 = arith.constant 0 : index
    %c0_30 = arith.constant 0 : index
    %61 = vector.load %arg5[%c0_29, %c0_30] : memref<1x72xf32, #tpu.memory_space<vmem>>, vector<1x72xf32>
    %cst_31 = arith.constant 9.99999974E-6 : f32
    %62 = vector.broadcast %cst_31 : f32 to vector<1x72xf32>
    %63 = arith.addf %60, %62 : vector<1x72xf32>
    %64 = math.rsqrt %63 : vector<1x72xf32>
    %65 = arith.mulf %61, %64 : vector<1x72xf32>
    %c0_32 = arith.constant 0 : index
    %c0_33 = arith.constant 0 : index
    %66 = vector.load %arg6[%c0_32, %c0_33] : memref<1x72xf32, #tpu.memory_space<vmem>>, vector<1x72xf32>
    %67 = arith.mulf %54, %65 : vector<1x72xf32>
    %68 = arith.subf %66, %67 : vector<1x72xf32>
    %69 = vector.broadcast %65 : vector<1x72xf32> to vector<34x72xf32>
    %70 = arith.mulf %43, %69 : vector<34x72xf32>
    %71 = vector.broadcast %68 : vector<1x72xf32> to vector<34x72xf32>
    %72 = arith.addf %70, %71 : vector<34x72xf32>
    %cst_34 = arith.constant 0.000000e+00 : f32
    %73 = vector.broadcast %cst_34 : f32 to vector<34x72xf32>
    %74 = arith.maximumf %72, %73 : vector<34x72xf32>
    %cst_35 = arith.constant 0.000000e+00 : f32
    %75 = vector.broadcast %cst_35 : f32 to vector<34x72xf32>
    %76 = arith.select %38, %74, %75 : vector<34x72xi1>, vector<34x72xf32>
    %cst_36 = arith.constant 0.000000e+00 : f32
    %77 = vector.broadcast %cst_36 : f32 to vector<1x72xf32>
    %c0_37 = arith.constant 0 : index
    %c0_38 = arith.constant 0 : index
    %78 = vector.load %arg10[%c0_37, %c0_38] : memref<36x72xf32, #tpu.memory_space<vmem>>, vector<1x72xf32>
    tpu.vector_store %arg10[%c0_37, %c0_38], %77 {strides = array<i32>} : memref<36x72xf32, #tpu.memory_space<vmem>>, vector<1x72xf32>,
    %c35 = arith.constant 35 : index
    %c0_39 = arith.constant 0 : index
    %79 = vector.load %arg10[%c35, %c0_39] : memref<36x72xf32, #tpu.memory_space<vmem>>, vector<1x72xf32>
    tpu.vector_store %arg10[%c35, %c0_39], %77 {strides = array<i32>} : memref<36x72xf32, #tpu.memory_space<vmem>>, vector<1x72xf32>,
    %c1_40 = arith.constant 1 : index
    %c0_41 = arith.constant 0 : index
    %80 = vector.load %arg10[%c1_40, %c0_41] : memref<36x72xf32, #tpu.memory_space<vmem>>, vector<34x72xf32>
    tpu.vector_store %arg10[%c1_40, %c0_41], %76 {strides = array<i32>} : memref<36x72xf32, #tpu.memory_space<vmem>>, vector<34x72xf32>,
    %c0_42 = arith.constant 0 : index
    %c0_43 = arith.constant 0 : index
    %81 = vector.load %arg10[%c0_42, %c0_43] : memref<36x72xf32, #tpu.memory_space<vmem>>, vector<34x72xf32>
    %c0_44 = arith.constant 0 : index
    %c0_45 = arith.constant 0 : index
    %c0_46 = arith.constant 0 : index
    %82 = vector.load %arg7[%c0_44, %c0_45, %c0_46] : memref<3x72x64xf32, #tpu.memory_space<vmem>>, vector<1x72x64xf32>
    %83 = vector.shape_cast %82 : vector<1x72x64xf32> to vector<72x64xf32>
    %cst_47 = arith.constant dense<0.000000e+00> : vector<34x64xf32>
    %84 = tpu.matmul %81, %83, %cst_47 {dimension_numbers = #tpu.dot_dimension_numbers<[1], [0], [0], [1], [0, 0, 1, 1], [], []>} : vector<34x72xf32>, vector<72x64xf32>, vector<34x64xf32> -> vector<34x64xf32>
    %c1_48 = arith.constant 1 : index
    %c0_49 = arith.constant 0 : index
    %85 = vector.load %arg10[%c1_48, %c0_49] : memref<36x72xf32, #tpu.memory_space<vmem>>, vector<34x72xf32>
    %c1_50 = arith.constant 1 : index
    %c0_51 = arith.constant 0 : index
    %c0_52 = arith.constant 0 : index
    %86 = vector.load %arg7[%c1_50, %c0_51, %c0_52] : memref<3x72x64xf32, #tpu.memory_space<vmem>>, vector<1x72x64xf32>
    %87 = vector.shape_cast %86 : vector<1x72x64xf32> to vector<72x64xf32>
    %cst_53 = arith.constant dense<0.000000e+00> : vector<34x64xf32>
    %88 = tpu.matmul %85, %87, %cst_53 {dimension_numbers = #tpu.dot_dimension_numbers<[1], [0], [0], [1], [0, 0, 1, 1], [], []>} : vector<34x72xf32>, vector<72x64xf32>, vector<34x64xf32> -> vector<34x64xf32>
    %89 = arith.addf %84, %88 : vector<34x64xf32>
    %c2_54 = arith.constant 2 : index
    %c0_55 = arith.constant 0 : index
    %90 = vector.load %arg10[%c2_54, %c0_55] : memref<36x72xf32, #tpu.memory_space<vmem>>, vector<34x72xf32>
    %c2_56 = arith.constant 2 : index
    %c0_57 = arith.constant 0 : index
    %c0_58 = arith.constant 0 : index
    %91 = vector.load %arg7[%c2_56, %c0_57, %c0_58] : memref<3x72x64xf32, #tpu.memory_space<vmem>>, vector<1x72x64xf32>
    %92 = vector.shape_cast %91 : vector<1x72x64xf32> to vector<72x64xf32>
    %cst_59 = arith.constant dense<0.000000e+00> : vector<34x64xf32>
    %93 = tpu.matmul %90, %92, %cst_59 {dimension_numbers = #tpu.dot_dimension_numbers<[1], [0], [0], [1], [0, 0, 1, 1], [], []>} : vector<34x72xf32>, vector<72x64xf32>, vector<34x64xf32> -> vector<34x64xf32>
    %94 = arith.addf %89, %93 : vector<34x64xf32>
    %c0_60 = arith.constant 0 : index
    %c0_61 = arith.constant 0 : index
    %95 = vector.load %arg8[%c0_60, %c0_61] : memref<1x64xf32, #tpu.memory_space<vmem>>, vector<1x64xf32>
    %96 = vector.broadcast %95 : vector<1x64xf32> to vector<34x64xf32>
    %97 = arith.addf %94, %96 : vector<34x64xf32>
    %cst_62 = arith.constant 0.000000e+00 : f32
    %98 = vector.broadcast %cst_62 : f32 to vector<34x64xf32>
    %99 = arith.maximumf %97, %98 : vector<34x64xf32>
    %100 = vector.extract_strided_slice %0 {offsets = [1, 4], sizes = [34, 64], strides = [1, 1]} : vector<36x72xf32> to vector<34x64xf32>
    %cst_63 = arith.constant 0.000000e+00 : f32
    %101 = vector.broadcast %cst_63 : f32 to vector<34x64xf32>
    %102 = arith.maximumf %100, %101 : vector<34x64xf32>
    %103 = arith.addf %99, %102 : vector<34x64xf32>
    %cst_64 = arith.constant 0.000000e+00 : f32
    %104 = vector.broadcast %cst_64 : f32 to vector<34x64xf32>
    %105 = arith.maximumf %103, %104 : vector<34x64xf32>
    %106 = vector.extract_strided_slice %105 {offsets = [0, 0], sizes = [16, 64], strides = [1, 1]} : vector<34x64xf32> to vector<16x64xf32>
    %c0_65 = arith.constant 0 : index
    %c0_66 = arith.constant 0 : index
    %c0_67 = arith.constant 0 : index
    %107 = vector.load %arg9[%c0_65, %c0_66, %c0_67] : memref<2x16x64xf32, #tpu.memory_space<vmem>>, vector<1x16x64xf32>
    %108 = vector.shape_cast %107 : vector<1x16x64xf32> to vector<16x64xf32>
    %109 = vector.shape_cast %106 : vector<16x64xf32> to vector<1x16x64xf32>
    tpu.vector_store %arg9[%c0_65, %c0_66, %c0_67], %109 {strides = array<i32>} : memref<2x16x64xf32, #tpu.memory_space<vmem>>, vector<1x16x64xf32>,
    %110 = vector.extract_strided_slice %105 {offsets = [18, 0], sizes = [16, 64], strides = [1, 1]} : vector<34x64xf32> to vector<16x64xf32>
    %c1_68 = arith.constant 1 : index
    %c0_69 = arith.constant 0 : index
    %c0_70 = arith.constant 0 : index
    %111 = vector.load %arg9[%c1_68, %c0_69, %c0_70] : memref<2x16x64xf32, #tpu.memory_space<vmem>>, vector<1x16x64xf32>
    %112 = vector.shape_cast %111 : vector<1x16x64xf32> to vector<16x64xf32>
    %113 = vector.shape_cast %110 : vector<16x64xf32> to vector<1x16x64xf32>
    tpu.vector_store %arg9[%c1_68, %c0_69, %c0_70], %113 {strides = array<i32>} : memref<2x16x64xf32, #tpu.memory_space<vmem>>, vector<1x16x64xf32>,
    return
  }
  func.func @transform_0(%arg0: i32) -> (i32, i32) {
    %c0_i32 = arith.constant 0 : i32
    %c0_i32_0 = arith.constant 0 : i32
    %c0_i32_1 = arith.constant 0 : i32
    return %c0_i32, %c0_i32_0 : i32, i32
  }
  func.func @transform_1(%arg0: i32) -> (i32, i32, i32) {
    %c0_i32 = arith.constant 0 : i32
    %c0_i32_0 = arith.constant 0 : i32
    %c0_i32_1 = arith.constant 0 : i32
    %c0_i32_2 = arith.constant 0 : i32
    return %c0_i32, %c0_i32_0, %c0_i32_1 : i32, i32, i32
  }
  func.func @transform_2(%arg0: i32) -> (i32, i32) {
    %c0_i32 = arith.constant 0 : i32
    %c0_i32_0 = arith.constant 0 : i32
    %c0_i32_1 = arith.constant 0 : i32
    return %c0_i32, %c0_i32_0 : i32, i32
  }
  func.func @transform_3(%arg0: i32) -> (i32, i32) {
    %c0_i32 = arith.constant 0 : i32
    %c0_i32_0 = arith.constant 0 : i32
    %c0_i32_1 = arith.constant 0 : i32
    return %c0_i32, %c0_i32_0 : i32, i32
  }
  func.func @transform_4(%arg0: i32) -> (i32, i32) {
    %c0_i32 = arith.constant 0 : i32
    %c0_i32_0 = arith.constant 0 : i32
    %c0_i32_1 = arith.constant 0 : i32
    return %c0_i32, %c0_i32_0 : i32, i32
  }
  func.func @transform_5(%arg0: i32) -> (i32, i32) {
    %c0_i32 = arith.constant 0 : i32
    %c0_i32_0 = arith.constant 0 : i32
    %c0_i32_1 = arith.constant 0 : i32
    return %c0_i32, %c0_i32_0 : i32, i32
  }
  func.func @transform_6(%arg0: i32) -> (i32, i32, i32) {
    %c0_i32 = arith.constant 0 : i32
    %c0_i32_0 = arith.constant 0 : i32
    %c0_i32_1 = arith.constant 0 : i32
    %c0_i32_2 = arith.constant 0 : i32
    return %c0_i32, %c0_i32_0, %c0_i32_1 : i32, i32, i32
  }
  func.func @transform_7(%arg0: i32) -> (i32, i32) {
    %c0_i32 = arith.constant 0 : i32
    %c0_i32_0 = arith.constant 0 : i32
    %c0_i32_1 = arith.constant 0 : i32
    return %c0_i32, %c0_i32_0 : i32, i32
  }
  func.func @transform_8(%arg0: i32) -> (i32, i32, i32) {
    %c0_i32 = arith.constant 0 : i32
    %c0_i32_0 = arith.constant 0 : i32
    %c0_i32_1 = arith.constant 0 : i32
    %c0_i32_2 = arith.constant 0 : i32
    return %c0_i32, %c0_i32_0, %c0_i32_1 : i32, i32, i32
  }
}

</mosaic_0001>

<bundles_post_ra>
// kernel: identity_block.1
= control target key start
LH: loop header
LB: loop body
LE: loop exit
PB: predicated region body
PF: predicated region fallthrough
CT: control target
= control target key end

     0   :  { %vm163_vm0 = vcmask 1045504   ;;  %vm58_vm1 = vcmask 1046528   ;;  %vm68_vm2 = vcmask 588800   ;;  %v220_v50 = vlaneseq  ;;  %s1380_s28 = smov 124   ;;  %s2159_s1 = inlined_call_operand.vmem [shape: f32[3,72,72], index: 1, kind: input, shape index: {}]   ;;  %s2160_s0 = inlined_call_operand.vmem [shape: f32[36,72], index: 0, kind: input, shape index: {}]   ;;  %s2161_s2 = inlined_call_operand.vmem [shape: f32[1,72], index: 2, kind: input, shape index: {}]   ;;  %s2162_s3 = inlined_call_operand.vmem [shape: f32[72,72], index: 3, kind: input, shape index: {}]   ;;  %s2163_s6 = inlined_call_operand.vmem [shape: f32[3,72,64], index: 6, kind: input, shape index: {}]   ;;  %s2164_s4 = inlined_call_operand.vmem [shape: f32[1,72], index: 4, kind: input, shape index: {}]   ;;  %s2165_s5 = inlined_call_operand.vmem [shape: f32[1,72], index: 5, kind: input, shape index: {}]   ;;  %s2166_s7 = inlined_call_operand.vmem [shape: f32[1,64], index: 7, kind: input, shape index: {}]   ;;  %s2167_s8 = inlined_call_operand.vmem [shape: f32[2,16,64], index: 8, kind: output, shape index: {}]  }
   0x1   :  { %v1324_v0 = vld [vmem:[%s2159_s1 + $0xd0] sm:$0xff]  ;;  %v1323_v1 = vld [vmem:[%s2159_s1 + $0xc8] sm:$0xff]  ;;  %v42_v3 = vld [vmem:[%s2159_s1 + $0x40] sm:$0xff] }
   0x2   :  { %v1305_v2 = vld [vmem:[%s2159_s1 + $0x88] sm:$0xff]  ;;  %190 = vmatpush.msra.mxu2 %v1324_v0  ;;  %v1304_v4 = vld [vmem:[%s2159_s1 + $0x80] sm:$0xff]  ;;  %128 = vmatpush.msra.mxu1 %v42_v3  ;;  %v41_v6 = vld [vmem:[%s2159_s1 + $0x38] sm:$0xff]  ;;  %v221_v51 = vshrl.u32 %v220_v50, 7 }
   0x3   :  { %86 = vmatpush.msra.mxu0 %v1305_v2  ;;  %v1322_v5 = vld [vmem:[%s2159_s1 + $0xc0] sm:$0xff]  ;;  %v1303_v7 = vld [vmem:[%s2159_s1 + $0x78] sm:$0xff]  ;;  %v40_v8 = vld [vmem:[%s2159_s1 + $0x30] sm:$0xff] }
   0x4   :  { %191 = vmatpush.msra.mxu2 %v1323_v1  ;;  %129 = vmatpush.msra.mxu1 %v41_v6  ;;  %v1321_v9 = vld [vmem:[%s2159_s1 + $0xb8] sm:$0xff]  ;;  %v1302_v10 = vld [vmem:[%s2159_s1 + $0x70] sm:$0xff]  ;;  %v39_v11 = vld [vmem:[%s2159_s1 + $0x28] sm:$0xff]  ;;  %v222_v52 = vadd.s32 8, %v221_v51  ;;  %v1545_v53 = vadd.s32 1, %v221_v51  ;;  %v223_v57 = vadd.s32 16, %v221_v51 }
   0x5   :  { %87 = vmatpush.msra.mxu0 %v1304_v4  ;;  %v1320_v12 = vld [vmem:[%s2159_s1 + $0xb0] sm:$0xff]  ;;  %v1301_v13 = vld [vmem:[%s2159_s1 + $0x68] sm:$0xff]  ;;  %v38_v15 = vld [vmem:[%s2159_s1 + $0x20] sm:$0xff] }
   0x6   :  { %192 = vmatpush.msra.mxu2 %v1322_v5  ;;  %130 = vmatpush.msra.mxu1 %v40_v8  ;;  %v1319_v14 = vld [vmem:[%s2159_s1 + $0xa8] sm:$0xff]  ;;  %v1300_v16 = vld [vmem:[%s2159_s1 + $0x60] sm:$0xff]  ;;  %v37_v19 = vld [vmem:[%s2159_s1 + $0x18] sm:$0xff]  ;;  %v1547_v54 = vadd.s32 1, %v222_v52  ;;  %v234_v55 = vand.u32 65535, %v1545_v53  ;;  %v235_v58 = vshrl.u32 %v1545_v53, 16 }
   0x7   :  { %88 = vmatpush.msra.mxu0 %v1303_v7  ;;  %v29_v17 = vld [vmem:[%s2160_s0] sm:$0xff]  ;;  %v30_v18 = vld [vmem:[%s2160_s0 + $0x8] sm:$0xff]  ;;  %v1299_v21 = vld [vmem:[%s2159_s1 + $0x58] sm:$0xff]  ;;  %v1554_v60 = vadd.s32 1, %v223_v57  ;;  %v224_v8 = vadd.s32 24, %v221_v51 }
   0x8   :  { %193 = vmatpush.msra.mxu2 %v1321_v9  ;;  %131 = vmatpush.msra.mxu1 %v39_v11  ;;  %v1318_v20 = vld [vmem:[%s2159_s1 + $0xa0] sm:$0xff]  ;;  %v36_v22 = vld [vmem:[%s2159_s1 + $0x10] sm:$0xff]  ;;  %v164_v23 = vrot.slane %v29_v17, 2  ;;  %v165_v24 = vrot.slane %v30_v18, 2  ;;  %v1317_v25 = vld [vmem:[%s2159_s1 + $0x98] sm:$0xff]  ;;  %v59_v27 = vrot.slane %v29_v17, 1 }
   0x9   :  { %89 = vmatpush.msra.mxu0 %v1302_v10  ;;  %v1298_v26 = vld [vmem:[%s2159_s1 + $0x50] sm:$0xff]  ;;  %v60_v28 = vrot.slane %v30_v18, 1  ;;  %v35_v29 = vld [vmem:[%s2159_s1 + $0x8] sm:$0xff]  ;;  %v34_v33 = vld [vmem:[%s2159_s1] sm:$0xff]  ;;  %v263_v56 = vand.u32 65535, %v1547_v54  ;;  %v1552_v59 = vmul.u32 58254, %v234_v55 }
   0xa   :  { %194 = vmatpush.msra.mxu2 %v1320_v12  ;;  %132 = vmatpush.msra.mxu1 %v38_v15  ;;  %v1316_v30 = vld [vmem:[%s2159_s1 + $0x90] sm:$0xff]  ;;  %v1297_v31 = vld [vmem:[%s2159_s1 + $0x48] sm:$0xff]  ;;  %v166_v32 = vsel %vm163_vm0, %v164_v23, %v165_v24  ;;  %v32_v40 = vld [vmem:[%s2160_s0 + $0x18] sm:$0xff]  ;;  %v264_v61 = vshrl.u32 %v1547_v54, 16  ;;  %v292_v63 = vand.u32 65535, %v1554_v60  ;;  %v237_v0 = vmul.u32 14564, %v234_v55 }
   0xb   :  { %90 = vmatpush.msra.mxu0 %v1301_v13  ;;  %v61_v34 = vsel %vm58_vm1, %v59_v27, %v60_v28  ;;  %v31_v35 = vld [vmem:[%s2160_s0 + $0x10] sm:$0xff]  ;;  %v169_v41 = vrot.slane %v32_v40, 2  ;;  %v64_v42 = vrot.slane %v32_v40, 1  ;;  %v33_v45 = vld [vmem:[%s2160_s0 + $0x20] sm:$0xf]  ;;  %v1557_v62 = vmul.u32 58254, %v263_v56 }
   0xc   :  { %195 = vmatpush.msra.mxu2 %v1319_v14  ;;  %133 = vmatpush.msra.mxu1 %v37_v19  ;;  %v167_v36 = vrot.slane %v31_v35, 2  ;;  %v62_v37 = vrot.slane %v31_v35, 1  ;;  %v171_v46 = vrot.slane %v33_v45, 2  ;;  %v66_v47 = vrot.slane %v33_v45, 1 }
   0xd   :  { %91 = vmatpush.msra.mxu0 %v1300_v16  ;;  %v1560_v1 = vmul.u32 14564, %v235_v58  ;;  %v241_v2 = vshll.u32 %v1552_v59, 16  ;;  %v266_v3 = vmul.u32 14564, %v263_v56  ;;  %v1563_v4 = vmul.u32 14564, %v264_v61 }
   0xe   :  { %196 = vmatpush.msra.mxu2 %v1318_v20  ;;  %134 = vmatpush.msra.mxu1 %v36_v22  ;;  %v168_v38 = vsel %vm163_vm0, %v165_v24, %v167_v36  ;;  %v63_v39 = vsel %vm58_vm1, %v60_v28, %v62_v37  ;;  %v170_v43 = vsel %vm163_vm0, %v167_v36, %v169_v41  ;;  %v270_v5 = vshll.u32 %v1557_v62, 16 }
   0xf   :  { %92 = vmatpush.msra.mxu0 %v1299_v21  ;;  %v65_v44 = vsel %vm58_vm1, %v62_v37, %v64_v42  ;;  %v172_v48 = vsel %vm163_vm0, %v169_v41, %v171_v46  ;;  %v67_v49 = vsel %vm58_vm1, %v64_v42, %v66_v47  ;;  %v293_v6 = vshrl.u32 %v1554_v60, 16 }
  0x10   :  { %197 = vmatpush.msra.mxu2 %v1317_v25  ;;  %135 = vmatpush.msra.mxu1 %v35_v29  ;;  %v1567_v7 = vmul.u32 58254, %v292_v63  ;;  %v243_v9 = vshll.u32 %v1560_v1, 16  ;;  %vm245_vm3 = vc.u32 %v237_v0, %v241_v2  ;;  %v247_v10 = vadd.s32 %v241_v2, %v237_v0  ;;  %v472_v0 = vld [vmem:[%s2162_s3 + $0x30] sm:$0xff] }
  0x11   :  { %93 = vmatpush.msra.mxu0 %v1298_v26  ;;  %v272_v11 = vshll.u32 %v1563_v4, 16  ;;  %vm274_vm4 = vc.u32 %v266_v3, %v270_v5  ;;  %v276_v12 = vadd.s32 %v270_v5, %v266_v3  ;;  %v1571_v13 = vmul.u32 14564, %v293_v6 }
  0x12   :  { %198 = vmatpush.msra.mxu2 %v1316_v30  ;;  %136 = vmatpush.msra.mxu1 %v34_v33  ;;  %v295_v14 = vmul.u32 14564, %v292_v63  ;;  %v299_v15 = vshll.u32 %v1567_v7, 16  ;;  %v1574_v16 = vadd.s32 1, %v224_v8  ;;  %v1378_v19 = vmov 0   ;;  %v471_v8 = vld [vmem:[%s2162_s3 + $0x28] sm:$0xff] }
  0x13   :  { %94 = vmatpush.msra.mxu0 %v1297_v31  ;;  %1325 = vmatmul.msk.f32.vlgmr.msra.gmra.mxu2 %vm68_vm2, %v166_v32  ;;  %v246_v20 = vsel %vm245_vm3, 1, %v1378_v19  ;;  %v275_v21 = vsel %vm274_vm4, 1, %v1378_v19  ;;  %vm249_vm5 = vc.u32 %v247_v10, %v243_v9  ;;  %vm278_vm6 = vc.u32 %v276_v12, %v272_v11 }
  0x14   :  { %1306 = vmatmul.msk.f32.vlgmr.msra.gmra.mxu0 %vm68_vm2, %v61_v34  ;;  %1311 = vmatmul.msk.f32.vlgmr.msra.gmra.mxu1 %vm68_vm2, %v29_v17  ;;  %v240_v17 = vmul.u32 58254, %v235_v58  ;;  %v321_v22 = vand.u32 65535, %v1574_v16  ;;  %v301_v23 = vshll.u32 %v1571_v13, 16  ;;  %v322_v24 = vshrl.u32 %v1574_v16, 16 }
  0x15   :  { %v305_v25 = vadd.s32 %v299_v15, %v295_v14  ;;  %v225_v28 = vadd.s32 32, %v221_v51  ;;  %vm303_vm7 = vc.u32 %v295_v14, %v299_v15  ;;  %v250_v32 = vsel %vm249_vm5, 1, %v1378_v19  ;;  %v473_v51 = vld [vmem:[%s2162_s3 + $0x38] sm:$0xff] }
  0x16   :  { %v324_v26 = vmul.u32 14564, %v321_v22  ;;  %v1581_v27 = vmul.u32 58254, %v321_v22  ;;  %v248_v29 = vadd.s32 %v246_v20, %v240_v17  ;;  %v1583_v31 = vmul.u32 14564, %v322_v24 }
  0x17   :  { %v279_v33 = vsel %vm278_vm6, 1, %v1378_v19  ;;  %v242_v36 = vshrl.u32 %v1552_v59, 16  ;;  %v298_v37 = vmul.u32 58254, %v293_v6  ;;  %vm307_vm8 = vc.u32 %v305_v25, %v301_v23 }
  0x18   :  { %v328_v34 = vshll.u32 %v1581_v27, 16  ;;  %v252_v41 = vadd.s32 %v250_v32, %v248_v29  ;;  %v271_v42 = vshrl.u32 %v1557_v62, 16  ;;  %v327_v50 = vmul.u32 58254, %v322_v24  ;;  %v469_v29 = vld [vmem:[%s2162_s3 + $0x18] sm:$0xff] }
  0x19   :  { %v1614_v58 = vand.u32 4294901760, %v473_v51  ;;  %v300_v63 = vshrl.u32 %v1567_v7, 16  ;;  %v1629_v3 = vand.u32 4294901760, %v472_v0  ;;  %v1651_v14 = vand.u32 4294901760, %v471_v8 }
  0x1a   :  { %vm332_vm9 = vc.u32 %v324_v26, %v328_v34  ;;  %v253_v59 = vadd.s32 %v252_v41, %v242_v36  ;;  %v329_v20 = vshrl.u32 %v1581_v27, 16  ;;  %v331_v32 = vshrl.u32 %v1583_v31, 16 }
  0x1b   :  { %1326 = vmatmul.msk.f32.gmra.mxu2 %vm68_vm2, %v168_v38  ;;  %v304_v38 = vsel %vm303_vm7, 1, %v1378_v19  ;;  %v333_v56 = vsel %vm332_vm9, 1, %v1378_v19  ;;  %v1627_v2 = vsub.f32 %v473_v51, %v1614_v58  ;;  %v1649_v12 = vsub.f32 %v472_v0, %v1629_v3  ;;  %v467_v51 = vld [vmem:[%s2162_s3 + $0x8] sm:$0xff] }
  0x1c   :  { %1307 = vmatmul.msk.f32.gmra.mxu0 %vm68_vm2, %v63_v39  ;;  %1312 = vmatmul.msk.f32.gmra.mxu1 %vm68_vm2, %v30_v18  ;;  %v269_v18 = vmul.u32 58254, %v264_v61  ;;  %v330_v39 = vshll.u32 %v1583_v31, 16  ;;  %v273_v61 = vshrl.u32 %v1563_v4, 16  ;;  %v335_v6 = vadd.s32 %v333_v56, %v327_v50 }
  0x1d   :  { %v1646_v11 = vand.u32 4294901760, %v1627_v2  ;;  %v1676_v27 = vsub.f32 %v471_v8, %v1651_v14  ;;  %v1703_v41 = vand.u32 4294901760, %v469_v29 }
  0x1e   :  { %v277_v30 = vadd.s32 %v275_v21, %v269_v18  ;;  %v302_v18 = vshrl.u32 %v1571_v13, 16  ;;  %v470_v21 = vld [vmem:[%s2162_s3 + $0x20] sm:$0xff] }
  0x1f   :  { %v528_v23 = vsub.f32 %v1627_v2, %v1646_v11 }
  0x23   :  { %1327 = vmatmul.msk.f32.gmra.mxu2 %vm68_vm2, %v170_v43  ;;  %v281_v43 = vadd.s32 %v279_v33, %v277_v30  ;;  %v1686_v33 = vand.u32 4294901760, %v528_v23 }
  0x24   :  { %1308 = vmatmul.msk.f32.gmra.mxu0 %vm68_vm2, %v65_v44  ;;  %1313 = vmatmul.msk.f32.gmra.mxu1 %vm68_vm2, %v31_v35  ;;  %v1588_v35 = vadd.s32 1, %v225_v28  ;;  %v474_v44 = vld [vmem:[%s2162_s3 + $0x40] sm:$0xff]  ;;  %v1678_v28 = vand.u32 4294901760, %v470_v21 }
  0x25   :  { %v282_v62 = vadd.s32 %v281_v43, %v271_v42 }
  0x26   :  { %v351_v52 = vshrl.u32 %v1588_v35, 16 }
  0x27   :  { %v1657_v17 = vadd.s32 %v282_v62, %v273_v61 }
  0x28   :  { %v1641_v9 = vmul.u32 14564, %v351_v52 }
  0x2b   :  { %1328 = vmatmul.msk.f32.gmra.mxu2 %vm68_vm2, %v172_v48  ;;  %v306_v48 = vadd.s32 %v304_v38, %v298_v37  ;;  %v1692_v37 = vand.u32 4294901760, %v1676_v27  ;;  %v1695_v38 = vsub.f32 %v470_v21, %v1678_v28 }
  0x2c   :  { %1309 = vmatmul.msk.f32.gmra.mxu0 %vm68_vm2, %v67_v49  ;;  %1314 = vmatmul.msk.f32.gmra.mxu1 %vm68_vm2, %v32_v40  ;;  %v334_v40 = vadd.s32 %v328_v34, %v324_v26  ;;  %v308_v49 = vsel %vm307_vm8, 1, %v1378_v19  ;;  %v1673_v26 = vand.u32 4294901760, %v1649_v12  ;;  %v359_v34 = vshll.u32 %v1641_v9, 16 }
  0x2d   :  { %v310_v4 = vadd.s32 %v308_v49, %v306_v48  ;;  %v1718_v49 = vsub.f32 %v469_v29, %v1703_v41 }
  0x2e   :  { %vm1610_vm10 = vc.u32 %v334_v40, %v330_v39  ;;  %v534_v36 = vsub.f32 %v1649_v12, %v1673_v26  ;;  %v356_v39 = vmul.u32 58254, %v351_v52  ;;  %v468_v40 = vld [vmem:[%s2162_s3 + $0x10] sm:$0xff] }
  0x2f   :  { %v337_v7 = vsel %vm1610_vm10, 1, %v1378_v19  ;;  %v311_v30 = vadd.s32 %v310_v4, %v300_v63  ;;  %v1705_v42 = vand.u32 4294901760, %v468_v40  ;;  %v466_v4 = vld [vmem:[%s2162_s3] sm:$0xff] }
  0x30   :  { %v339_v13 = vadd.s32 %v337_v7, %v335_v6  ;;  %v284_v6 = vshrl.u32 %v1657_v17, 4  ;;  %v1748_v7 = vand.u32 4294901760, %v1718_v49 }
  0x31   :  { %v1721_v50 = vsub.f32 %v468_v40, %v1705_v42  ;;  %v312_v61 = vadd.s32 %v311_v30, %v302_v18 }
  0x32   :  { %v340_v43 = vadd.s32 %v339_v13, %v329_v20  ;;  %v552_v21 = vsub.f32 %v1718_v49, %v1748_v7 }
  0x33   :  { %1329 = vmatmul.msk.f32.gmra.mxu2 %vm68_vm2, %v171_v46  ;;  %v1598_v46 = vand.u32 4294901760, %v474_v44  ;;  %v1751_v8 = vand.u32 4294901760, %v1721_v50  ;;  %v313_v13 = vshrl.u32 %v312_v61, 4 }
  0x34   :  { %1310 = vmatmul.msk.f32.gmra.mxu0 %vm68_vm2, %v66_v47  ;;  %1315 = vmatmul.msk.f32.gmra.mxu1 %vm68_vm2, %v33_v45  ;;  %v244_v45 = vshrl.u32 %v1560_v1, 16  ;;  %v350_v47 = vand.u32 65535, %v1588_v35  ;;  %v1773_v29 = vand.u32 4294901760, %v552_v21 }
  0x35   :  { %v1607_v55 = vsub.f32 %v474_v44, %v1598_v46  ;;  %486 = vmatpush.msrb.mxu0 %v1598_v46  ;;  %706 = vmatpush.msrb.mxu2 %v1598_v46  ;;  %v1708_v44 = vand.u32 4294901760, %v534_v36  ;;  %v558_v17 = vsub.f32 %v1721_v50, %v1751_v8  ;;  %v360_v36 = vshrl.u32 %v1641_v9, 16 }
  0x36   :  { %v1631_v5 = vmul.u32 58254, %v350_v47  ;;  %v1655_v15 = vadd.s32 %v253_v59, %v244_v45  ;;  %v353_v24 = vmul.u32 14564, %v350_v47  ;;  %v540_v45 = vsub.f32 %v1676_v27, %v1692_v37 }
  0x37   :  { %v1624_v1 = vand.u32 4294901760, %v1607_v55  ;;  %488 = vmatpush.msrb.mxu0 %v1614_v58  ;;  %708 = vmatpush.msrb.mxu2 %v1614_v58  ;;  %v1713_v47 = vand.u32 4294901760, %v1695_v38  ;;  %v1775_v30 = vand.u32 4294901760, %v558_v17 }
  0x38   :  { %v357_v25 = vshll.u32 %v1631_v5, 16  ;;  %v255_v57 = vshrl.u32 %v1655_v15, 4  ;;  %v1734_v59 = vand.u32 4294901760, %v540_v45  ;;  %v358_v18 = vshrl.u32 %v1631_v5, 16 }
  0x39   :  { %v522_v10 = vsub.f32 %v1607_v55, %v1624_v1  ;;  %660 = vmatpush.msrb.mxu1 %v1624_v1  ;;  %490 = vmatpush.msrb.mxu0 %v1629_v3  ;;  %v546_v62 = vsub.f32 %v1695_v38, %v1713_v47  ;;  %v285_v5 = vmul.u32 18, %v284_v6 }
  0x3a   :  { %710 = vmatpush.msrb.mxu2 %v1629_v3  ;;  %vm361_vm11 = vc.u32 %v353_v24, %v357_v25  ;;  %v363_v31 = vadd.s32 %v357_v25, %v353_v24  ;;  %v1765_v24 = vand.u32 4294901760, %v466_v4 }
  0x3b   :  { %v1665_v22 = vand.u32 4294901760, %v522_v10  ;;  %664 = vmatpush.msrb.mxu1 %v1646_v11  ;;  %492 = vmatpush.msrb.mxu0 %v1651_v14  ;;  %v362_v48 = vsel %vm361_vm11, 1, %v1378_v19  ;;  %v1753_v10 = vand.u32 4294901760, %v467_v51  ;;  %v1755_v15 = vand.u32 4294901760, %v546_v62 }
  0x3c   :  { %712 = vmatpush.msrb.mxu2 %v1651_v14  ;;  %vm365_vm12 = vc.u32 %v363_v31, %v359_v34  ;;  %v364_v63 = vadd.s32 %v362_v48, %v356_v39  ;;  %v1784_v40 = vsub.f32 %v466_v4, %v1765_v24  ;;  %v256_v31 = vmul.u32 18, %v255_v57 }
  0x3d   :  { %524 = vmatpush.msra.mxu3 %v1665_v22  ;;  %668 = vmatpush.msrb.mxu1 %v1673_v26  ;;  %v366_v0 = vsel %vm365_vm12, 1, %v1378_v19  ;;  %v341_v19 = vadd.s32 %v340_v43, %v331_v32  ;;  %v1763_v23 = vsub.f32 %v467_v51, %v1753_v10  ;;  %v314_v51 = vmul.u32 18, %v313_v13 }
  0x3e   :  { %494 = vmatpush.msrb.mxu0 %v1678_v28  ;;  %714 = vmatpush.msrb.mxu2 %v1678_v28  ;;  %v368_v20 = vadd.s32 %v366_v0, %v364_v63  ;;  %v1793_v9 = vand.u32 4294901760, %v1784_v40  ;;  %v286_v61 = vsub.s32 %v1547_v54, %v285_v5  ;;  %v257_v4 = vsub.s32 %v1545_v53, %v256_v31 }
  0x3f   :  { %530 = vmatpush.msra.mxu3 %v1686_v33  ;;  %672 = vmatpush.msrb.mxu1 %v1692_v37  ;;  %v1778_v32 = vand.u32 4294901760, %v1763_v23  ;;  %v342_v34 = vshrl.u32 %v341_v19, 4  ;;  %v315_v19 = vsub.s32 %v1554_v60, %v314_v51  ;;  %v1858_v51 = vld [vmem:[%s2161_s2] ss:$0 sm:$0xff] }
  0x40   :  { %496 = vmatpush.msrb.mxu0 %v1703_v41  ;;  %716 = vmatpush.msrb.mxu2 %v1703_v41  ;;  %v369_v39 = vadd.s32 %v368_v20, %v358_v18  ;;  %v570_v0 = vsub.f32 %v1784_v40, %v1793_v9  ;;  %vm377_vm13 = vcmp.ne.s32.totalorder %v286_v61, 0  ;;  %vm382_vm14 = vcmp.lt.s32.totalorder %v286_v61, 0 }
  0x41   :  { %536 = vmatpush.msra.mxu3 %v1708_v44  ;;  %676 = vmatpush.msrb.mxu1 %v1713_v47  ;;  %v564_v48 = vsub.f32 %v1763_v23, %v1778_v32  ;;  %v343_v62 = vmul.u32 18, %v342_v34  ;;  %vm376_vm15 = vcmp.ne.s32.totalorder %v257_v4, 0  ;;  %vm381_vm0 = vcmp.lt.s32.totalorder %v257_v4, 0  ;;  %vm387_vm5 = vmand %vm382_vm14, %vm377_vm13 }
  0x42   :  { %498 = vmatpush.msrb.mxu0 %v1705_v42  ;;  %718 = vmatpush.msrb.mxu2 %v1705_v42  ;;  %v370_v63 = vadd.s32 %v369_v39, %v360_v36  ;;  %v1809_v18 = vand.u32 4294901760, %v570_v0  ;;  %v392_v21 = vadd.s32 18, %v286_v61  ;;  %vm378_vm3 = vcmp.ne.s32.totalorder %v315_v19, 0  ;;  %vm1827_vm6 = vmand %vm381_vm0, %vm376_vm15  ;;  %v1374_v0 = vld [vmem:[%s2160_s0 + $0x8] sm:$0xff] }
  0x43   :  { %542 = vmatpush.msra.mxu3 %v1734_v59  ;;  %680 = vmatpush.msrb.mxu1 %v1748_v7  ;;  %v1798_v57 = vand.u32 4294901760, %v564_v48  ;;  %v344_v54 = vsub.s32 %v1574_v16, %v343_v62  ;;  %vm383_vm4 = vcmp.lt.s32.totalorder %v315_v19, 0  ;;  %v391_v16 = vadd.s32 18, %v257_v4 }
  0x44   :  { %500 = vmatpush.msrb.mxu0 %v1753_v10  ;;  %720 = vmatpush.msrb.mxu2 %v1753_v10  ;;  %v371_v53 = vshrl.u32 %v370_v63, 4  ;;  %v393_v13 = vadd.s32 18, %v315_v19  ;;  %vm388_vm9 = vmand %vm383_vm4, %vm378_vm3  ;;  %v397_v36 = vsel %vm387_vm5, %v392_v21, %v286_v61 }
  0x45   :  { %548 = vmatpush.msra.mxu3 %v1755_v15  ;;  %684 = vmatpush.msrb.mxu1 %v1751_v8  ;;  %vm379_vm7 = vcmp.ne.s32.totalorder %v344_v54, 0  ;;  %vm384_vm8 = vcmp.lt.s32.totalorder %v344_v54, 0  ;;  %v394_v31 = vadd.s32 18, %v344_v54  ;;  %vm402_vm11 = vcmp.ge.s32.totalorder %v397_v36, 1 }
  0x46   :  { %502 = vmatpush.msrb.mxu0 %v1765_v24  ;;  %722 = vmatpush.msrb.mxu2 %v1765_v24  ;;  %v372_v5 = vmul.u32 18, %v371_v53  ;;  %vm1845_vm10 = vmand %vm384_vm8, %vm379_vm7  ;;  %vm407_vm12 = vcmp.le.s32.totalorder %v397_v36, 16 }
  0x47   :  { %554 = vmatpush.msra.mxu3 %v1773_v29  ;;  %688 = vmatpush.msrb.mxu1 %v1778_v32  ;;  %vm1871_vm3 = vmand %vm402_vm11, %vm407_vm12 }
  0x48   :  { %626 = vmatpush.msra.mxu0 %v1598_v46  ;;  %879 = vmatpush.msra.mxu2 %v1598_v46 }
  0x49   :  { %560 = vmatpush.msra.mxu3 %v1775_v30  ;;  %692 = vmatpush.msrb.mxu1 %v1793_v9 }
  0x4a   :  { %628 = vmatpush.msra.mxu0 %v1614_v58  ;;  %881 = vmatpush.msra.mxu2 %v1614_v58 }
  0x4b   :  { %566 = vmatpush.msra.mxu3 %v1798_v57  ;;  %840 = vmatpush.msra.mxu1 %v1607_v55 }
  0x4c   :  { %630 = vmatpush.msra.mxu0 %v1629_v3  ;;  %883 = vmatpush.msra.mxu2 %v1629_v3 }
  0x4d   :  { %843 = vmatpush.msra.mxu1 %v1627_v2  ;;  %572 = vmatpush.msra.mxu3 %v1809_v18 }
  0x4e   :  { %632 = vmatpush.msra.mxu0 %v1651_v14  ;;  %885 = vmatpush.msra.mxu2 %v1651_v14 }
  0x4f   :  { %587 = vmatpush.msrb.mxu3 %v1607_v55  ;;  %846 = vmatpush.msra.mxu1 %v1649_v12 }
  0x50   :  { %634 = vmatpush.msra.mxu0 %v1678_v28  ;;  %887 = vmatpush.msra.mxu2 %v1678_v28 }
  0x51   :  { %590 = vmatpush.msrb.mxu3 %v1627_v2  ;;  %849 = vmatpush.msra.mxu1 %v1676_v27 }
  0x52   :  { %636 = vmatpush.msra.mxu0 %v1703_v41  ;;  %889 = vmatpush.msra.mxu2 %v1703_v41 }
  0x53   :  { %593 = vmatpush.msrb.mxu3 %v1649_v12  ;;  %852 = vmatpush.msra.mxu1 %v1695_v38  ;;  %v398_v12 = vsel %vm388_vm9, %v393_v13, %v315_v19 }
  0x54   :  { %638 = vmatpush.msra.mxu0 %v1705_v42  ;;  %891 = vmatpush.msra.mxu2 %v1705_v42  ;;  %vm403_vm15 = vcmp.ge.s32.totalorder %v398_v12, 1  ;;  %vm408_vm0 = vcmp.le.s32.totalorder %v398_v12, 16 }
  0x55   :  { %596 = vmatpush.msrb.mxu3 %v1676_v27  ;;  %855 = vmatpush.msra.mxu1 %v1718_v49  ;;  %vm1887_vm9 = vmand %vm403_vm15, %vm408_vm0  ;;  %vm437_vm15 = vcmask 582656   ;;  %vm1028_vm0 = vcmask 581632  }
  0x56   :  { %640 = vmatpush.msra.mxu0 %v1753_v10  ;;  %893 = vmatpush.msra.mxu2 %v1753_v10 }
  0x57   :  { %599 = vmatpush.msrb.mxu3 %v1695_v38  ;;  %858 = vmatpush.msra.mxu1 %v1721_v50 }
  0x58   :  { %642 = vmatpush.msra.mxu0 %v1765_v24  ;;  %895 = vmatpush.msra.mxu2 %v1765_v24 }
  0x59   :  { %602 = vmatpush.msrb.mxu3 %v1718_v49  ;;  %861 = vmatpush.msra.mxu1 %v1763_v23 }
  0x5b   :  { %605 = vmatpush.msrb.mxu3 %v1721_v50  ;;  %864 = vmatpush.msra.mxu1 %v1784_v40 }
  0x5d   :  { %608 = vmatpush.msrb.mxu3 %v1763_v23 }
  0x5f   :  { %611 = vmatpush.msrb.mxu3 %v1784_v40 }
  0x91   :  { %v1728_v52 = vpop.f32.mrf.mxu0  ;;  %v1730_v56 = vpop.f32.mrf.mxu1 }
  0x92   :  { %v139_v34 = vadd.f32 %v1730_v56, %v1728_v52  ;;  %v373_v56 = vsub.s32 %v1588_v35, %v372_v5  ;;  %v399_v35 = vsel %vm1845_vm10, %v394_v31, %v344_v54 }
  0x93   :  { %vm404_vm7 = vcmp.ge.s32.totalorder %v399_v35, 1  ;;  %vm409_vm8 = vcmp.le.s32.totalorder %v399_v35, 16 }
  0x94   :  { %vm380_vm4 = vcmp.ne.s32.totalorder %v373_v56, 0  ;;  %vm385_vm5 = vcmp.lt.s32.totalorder %v373_v56, 0  ;;  %v395_v54 = vadd.s32 18, %v373_v56  ;;  %vm1897_vm11 = vmand %vm404_vm7, %vm409_vm8 }
  0x95   :  { %vm390_vm10 = vmand %vm385_vm5, %vm380_vm4 }
  0x96   :  { %v1769_v25 = vpop.f32.mrf.mxu2  ;;  %v400_v13 = vsel %vm390_vm10, %v395_v54, %v373_v56 }
  0x97   :  { %v215_v48 = vadd.f32 %v1769_v25, %v139_v34  ;;  %vm405_vm12 = vcmp.ge.s32.totalorder %v400_v13, 1 }
  0x99   :  { %v99_v43 = vpop.f32.mrf.mxu0  ;;  %v141_v45 = vpop.f32.mrf.mxu1 }
  0x9a   :  { %v142_v17 = vadd.f32 %v141_v45, %v99_v43  ;;  %v396_v43 = vsel %vm1827_vm6, %v391_v16, %v257_v4  ;;  %v420_v4 = vadd.f32 %v1858_v51, %v215_v48 }
  0x9b   :  { %vm401_vm13 = vcmp.ge.s32.totalorder %v396_v43, 1  ;;  %vm406_vm14 = vcmp.le.s32.totalorder %v396_v43, 16 }
  0x9c   :  { %vm1877_vm6 = vmand %vm401_vm13, %vm406_vm14  ;;  %vm410_vm13 = vcmp.le.s32.totalorder %v400_v13, 16 }
  0x9d   :  { %vm1934_vm14 = vmand %vm405_vm12, %vm410_vm13 }
  0x9e   :  { %v203_v6 = vpop.f32.mrf.mxu2 }
  0x9f   :  { %v216_v45 = vadd.f32 %v203_v6, %v142_v17 }
  0xa1   :  { %v102_v60 = vpop.f32.mrf.mxu0  ;;  %v144_v20 = vpop.f32.mrf.mxu1  ;;  %v421_v25 = vadd.f32 %v1858_v51, %v216_v45 }
  0xa2   :  { %v145_v2 = vadd.f32 %v144_v20, %v102_v60  ;;  %v1903_v20 = vsel %vm1877_vm6, %v420_v4, 0.0 }
  0xa3   :  { %v1893_v53 = vsel %vm1871_vm3, %v421_v25, 0.0  ;;  %v430_v40 = vsel %vm68_vm2, %v1903_v20, 0.0 }
  0xa4   :  { %v447_v23 = vmul.f32 %v1893_v53, %v1893_v53  ;;  %v431_v36 = vsel %vm68_vm2, %v1893_v53, 0.0 }
  0xa5   :  { %v432_v12 = vadd.f32 %v431_v36, %v430_v40 }
  0xa6   :  { %v206_v39 = vpop.f32.mrf.mxu2  ;;  %v452_v31 = vsel %vm68_vm2, %v447_v23, 0.0 }
  0xa7   :  { %v217_v61 = vadd.f32 %v206_v39, %v145_v2  ;;  %v446_v2 = vmul.f32 %v1903_v20, %v1903_v20 }
  0xa9   :  { %v105_v27 = vpop.f32.mrf.mxu0  ;;  %v147_v62 = vpop.f32.mrf.mxu1  ;;  %v422_v49 = vadd.f32 %v1858_v51, %v217_v61  ;;  %v451_v48 = vsel %vm68_vm2, %v446_v2, 0.0 }
  0xaa   :  { %v148_v63 = vadd.f32 %v147_v62, %v105_v27  ;;  %v453_v35 = vadd.f32 %v452_v31, %v451_v48 }
  0xab   :  { %v1907_v21 = vsel %vm1887_vm9, %v422_v49, 0.0 }
  0xac   :  { %v448_v39 = vmul.f32 %v1907_v21, %v1907_v21  ;;  %v433_v43 = vsel %vm68_vm2, %v1907_v21, 0.0 }
  0xad   :  { %v434_v25 = vadd.f32 %v433_v43, %v432_v12 }
  0xae   :  { %v209_v19 = vpop.f32.mrf.mxu2  ;;  %v454_v61 = vsel %vm68_vm2, %v448_v39, 0.0 }
  0xaf   :  { %v218_v60 = vadd.f32 %v209_v19, %v148_v63  ;;  %v455_v49 = vadd.f32 %v454_v61, %v453_v35 }
  0xb1   :  { %v423_v16 = vadd.f32 %v1858_v51, %v218_v60  ;;  %v108_v17 = vpop.f32.mrf.mxu0  ;;  %v150_v55 = vpop.f32.mrf.mxu1 }
  0xb2   :  { %v151_v34 = vadd.f32 %v150_v55, %v108_v17 }
  0xb3   :  { %v1915_v5 = vsel %vm1897_vm11, %v423_v16, 0.0 }
  0xb4   :  { %v449_v45 = vmul.f32 %v1915_v5, %v1915_v5  ;;  %v435_v27 = vsel %vm68_vm2, %v1915_v5, 0.0 }
  0xb5   :  { %v436_v19 = vadd.f32 %v435_v27, %v434_v25 }
  0xb6   :  { %v212_v52 = vpop.f32.mrf.mxu2  ;;  %v456_v4 = vsel %vm68_vm2, %v449_v45, 0.0 }
  0xb7   :  { %v219_v56 = vadd.f32 %v212_v52, %v151_v34  ;;  %v457_v17 = vadd.f32 %v456_v4, %v455_v49 }
  0xb9   :  { %v424_v63 = vadd.f32 %v1858_v51, %v219_v56 }
  0xbb   :  { %v1942_v54 = vsel %vm1934_vm14, %v424_v63, 0.0 }
  0xbc   :  { %v438_v60 = vsel %vm437_vm15, %v1942_v54, 0.0  ;;  %v450_v16 = vmul.f32 %v1942_v54, %v1942_v54 }
  0xbd   :  { %v439_v55 = vadd.f32 %v438_v60, %v436_v19 }
  0xbe   :  { %v458_v23 = vsel %vm437_vm15, %v450_v16, 0.0 }
  0xbf   :  { %v440_v51 = vrot.slane %v439_v55, 4  ;;  %v459_v13 = vadd.f32 %v458_v23, %v457_v17 }
  0xc1   :  { %v441_v34 = vadd.f32 %v440_v51, %v439_v55  ;;  %v460_v2 = vrot.slane %v459_v13, 4  ;;  %v1357_v55 = vld [vmem:[%s2163_s6 + $0xd0] sm:$0xff]  ;;  %v1337_v51 = vld [vmem:[%s2163_s6 + $0x80] sm:$0xff] }
  0xc3   :  { %v442_v36 = vrot.slane %v441_v34, 2  ;;  %v461_v39 = vadd.f32 %v460_v2, %v459_v13  ;;  %v1048_v13 = vld [vmem:[%s2163_s6 + $0x38] sm:$0xff] }
  0xc5   :  { %v443_v40 = vadd.f32 %v442_v36, %v441_v34  ;;  %v462_v31 = vrot.slane %v461_v39, 2  ;;  %v1356_v34 = vld [vmem:[%s2163_s6 + $0xc8] sm:$0xff]  ;;  %v1336_v36 = vld [vmem:[%s2163_s6 + $0x78] sm:$0xff] }
  0xc7   :  { %v444_v43 = vrot.slane %v443_v40, 1  ;;  %v463_v45 = vadd.f32 %v462_v31, %v461_v39  ;;  %v1047_v39 = vld [vmem:[%s2163_s6 + $0x30] sm:$0xff] }
  0xc9   :  { %v445_v52 = vadd.f32 %v444_v43, %v443_v40  ;;  %v464_v12 = vrot.slane %v463_v45, 1  ;;  %v1355_v40 = vld [vmem:[%s2163_s6 + $0xc0] sm:$0xff]  ;;  %v1335_v43 = vld [vmem:[%s2163_s6 + $0x70] sm:$0xff] }
  0xcb   :  { %v476_v56 = vsel %vm68_vm2, %v445_v52, 0  ;;  %v465_v48 = vadd.f32 %v464_v12, %v463_v45  ;;  %v1046_v45 = vld [vmem:[%s2163_s6 + $0x28] sm:$0xff]  ;;  %v1354_v52 = vld [vmem:[%s2163_s6 + $0xb8] sm:$0xff] }
  0xcc   :  { %v503_v61 = vand.u32 4294901760, %v476_v56  ;;  %v1334_v12 = vld [vmem:[%s2163_s6 + $0x68] sm:$0xff] }
  0xcd   :  { %v729_v27 = vsel %vm68_vm2, %v465_v48, 0  ;;  %v1353_v48 = vld [vmem:[%s2163_s6 + $0xb0] sm:$0xff] }
  0xce   :  { %574 = vmatmul.f32.vlgmr.msra.gmra.mxu3 %v503_v61  ;;  %694 = vmatmul.f32.vlgmr.msrb.gmra.mxu1 %v503_v61  ;;  %v504_v35 = vsub.f32 %v476_v56, %v503_v61  ;;  %v756_v25 = vand.u32 4294901760, %v729_v27  ;;  %v1045_v56 = vld [vmem:[%s2163_s6 + $0x20] sm:$0xff] }
  0xcf   :  { %724 = vmatmul.f32.vlgmr.msrb.gmra.mxu2 %v503_v61  ;;  %739 = vmatpush.msra.mxu3 %v1598_v46  ;;  %v1333_v61 = vld [vmem:[%s2163_s6 + $0x60] sm:$0xff] }
  0xd0   :  { %v505_v63 = vand.u32 4294901760, %v504_v35  ;;  %v757_v49 = vsub.f32 %v729_v27, %v756_v25  ;;  %v1044_v27 = vld [vmem:[%s2163_s6 + $0x18] sm:$0xff] }
  0xd1   :  { %741 = vmatpush.msra.mxu3 %v1614_v58 }
  0xd2   :  { %v506_v4 = vsub.f32 %v504_v35, %v505_v63  ;;  %v758_v60 = vand.u32 4294901760, %v757_v49 }
  0xd3   :  { %743 = vmatpush.msra.mxu3 %v1629_v3 }
  0xd4   :  { %v507_v19 = vand.u32 4294901760, %v506_v4  ;;  %v759_v16 = vsub.f32 %v757_v49, %v758_v60  ;;  %v1043_v4 = vld [vmem:[%s2163_s6 + $0x10] sm:$0xff] }
  0xd5   :  { %745 = vmatpush.msra.mxu3 %v1651_v14 }
  0xd6   :  { %508 = vmatmul.f32.vlgmr.msrb.gmra.mxu0 %v507_v19  ;;  %614 = vmatmul.f32.vlgmr.msrb.gmra.mxu3 %v504_v35  ;;  %v760_v17 = vand.u32 4294901760, %v759_v16  ;;  %v1352_v35 = vld [vmem:[%s2163_s6 + $0xa8] sm:$0xff]  ;;  %v1331_v19 = vld [vmem:[%s2163_s6 + $0x50] sm:$0xff] }
  0xd7   :  { %747 = vmatpush.msra.mxu3 %v1678_v28  ;;  %777 = vmatpush.msrb.mxu0 %v1665_v22 }
  0xd8   :  { %867 = vmatmul.f32.vlgmr.msra.gmra.mxu1 %v757_v49  ;;  %899 = vmatmul.f32.vlgmr.msra.gmra.mxu2 %v758_v60  ;;  %v1351_v49 = vld [vmem:[%s2163_s6 + $0xa0] sm:$0xff]  ;;  %v1042_v60 = vld [vmem:[%s2163_s6 + $0x8] sm:$0xff] }
  0xd9   :  { %749 = vmatpush.msra.mxu3 %v1703_v41  ;;  %783 = vmatpush.msrb.mxu0 %v1686_v33 }
  0xdb   :  { %751 = vmatpush.msra.mxu3 %v1705_v42  ;;  %789 = vmatpush.msrb.mxu0 %v1708_v44 }
  0xdd   :  { %753 = vmatpush.msra.mxu3 %v1753_v10  ;;  %795 = vmatpush.msrb.mxu0 %v1734_v59 }
  0xde   :  { %646 = vmatmul.f32.vlgmr.msra.gmra.mxu0 %v505_v63  ;;  %v1332_v63 = vld [vmem:[%s2163_s6 + $0x58] sm:$0xff] }
  0xdf   :  { %755 = vmatpush.msra.mxu3 %v1765_v24  ;;  %801 = vmatpush.msrb.mxu0 %v1755_v15 }
  0xe0   :  { %761 = vmatmul.f32.vlgmr.msra.gmra.mxu3 %v760_v17  ;;  %v1350_v17 = vld [vmem:[%s2163_s6 + $0x98] sm:$0xff] }
  0xe1   :  { %913 = vmatpush.msrb.mxu3 %v1624_v1  ;;  %807 = vmatpush.msrb.mxu0 %v1773_v29 }
  0xe3   :  { %917 = vmatpush.msrb.mxu3 %v1646_v11  ;;  %813 = vmatpush.msrb.mxu0 %v1775_v30 }
  0xe5   :  { %921 = vmatpush.msrb.mxu3 %v1673_v26  ;;  %819 = vmatpush.msrb.mxu0 %v1798_v57  ;;  %v1338_v57 = vld [vmem:[%s2163_s6 + $0x88] sm:$0xff] }
  0xe6   :  { %1087 = vmatpush.msrb.mxu1 %v1338_v57 }
  0xe7   :  { %925 = vmatpush.msrb.mxu3 %v1692_v37  ;;  %825 = vmatpush.msrb.mxu0 %v1809_v18  ;;  %v1049_v18 = vld [vmem:[%s2163_s6 + $0x40] sm:$0xff] }
  0xe8   :  { %827 = vmatmul.f32.vlgmr.msrb.gmra.mxu0 %v756_v25  ;;  %1134 = vmatpush.msrb.mxu2 %v1049_v18 }
  0xe9   :  { %929 = vmatpush.msrb.mxu3 %v1713_v47  ;;  %959 = vmatpush.msra.mxu0 %v1598_v46 }
  0xea   :  { %1088 = vmatpush.msrb.mxu1 %v1337_v51  ;;  %1135 = vmatpush.msrb.mxu2 %v1048_v13 }
  0xeb   :  { %933 = vmatpush.msrb.mxu3 %v1748_v7  ;;  %961 = vmatpush.msra.mxu0 %v1614_v58 }
  0xec   :  { %1089 = vmatpush.msrb.mxu1 %v1336_v36  ;;  %1136 = vmatpush.msrb.mxu2 %v1047_v39 }
  0xed   :  { %937 = vmatpush.msrb.mxu3 %v1751_v8  ;;  %963 = vmatpush.msra.mxu0 %v1629_v3 }
  0xee   :  { %1090 = vmatpush.msrb.mxu1 %v1335_v43  ;;  %1137 = vmatpush.msrb.mxu2 %v1046_v45  ;;  %v1376_v45 = vld [vmem:[%s2160_s0 + $0x18] sm:$0xff] }
  0xef   :  { %941 = vmatpush.msrb.mxu3 %v1778_v32  ;;  %965 = vmatpush.msra.mxu0 %v1651_v14 }
  0xf0   :  { %1091 = vmatpush.msrb.mxu1 %v1334_v12  ;;  %1138 = vmatpush.msrb.mxu2 %v1045_v56  ;;  %v1377_v12 = vld [vmem:[%s2160_s0 + $0x20] sm:$0xf] }
  0xf1   :  { %945 = vmatpush.msrb.mxu3 %v1793_v9  ;;  %967 = vmatpush.msra.mxu0 %v1678_v28  ;;  %v1244_v56 = vmax.f32 %v1377_v12, 0.0 }
  0xf2   :  { %947 = vmatmul.f32.vlgmr.msrb.gmra.mxu3 %v756_v25  ;;  %1092 = vmatpush.msrb.mxu1 %v1333_v61 }
  0xf3   :  { %969 = vmatpush.msra.mxu0 %v1703_v41  ;;  %1196 = vmatpush.msra.mxu3 %v1357_v55 }
  0xf4   :  { %1139 = vmatpush.msrb.mxu2 %v1044_v27  ;;  %1093 = vmatpush.msrb.mxu1 %v1332_v63  ;;  %v1257_v27 = vrot.slane %v1244_v56, 1 }
  0xf5   :  { %971 = vmatpush.msra.mxu0 %v1705_v42  ;;  %1197 = vmatpush.msra.mxu3 %v1356_v34 }
  0xf6   :  { %1140 = vmatpush.msrb.mxu2 %v1043_v4  ;;  %1094 = vmatpush.msrb.mxu1 %v1331_v19 }
  0xf7   :  { %973 = vmatpush.msra.mxu0 %v1753_v10  ;;  %1198 = vmatpush.msra.mxu3 %v1355_v40 }
  0xf8   :  { %1141 = vmatpush.msrb.mxu2 %v1042_v60  ;;  %1267 = vrot.lane.b32.xlu2 %v1257_v27, %s1380_s28 }
  0xf9   :  { %975 = vmatpush.msra.mxu0 %v1765_v24  ;;  %1199 = vmatpush.msra.mxu3 %v1354_v52  ;;  %v1243_v52 = vmax.f32 %v1376_v45, 0.0 }
  0xfa   :  { %977 = vmatmul.f32.vlgmr.msra.gmra.mxu0 %v756_v25  ;;  %v1379_v25 = vmov 0.0  }
  0xfb   :  { %1200 = vmatpush.msra.mxu3 %v1353_v48  ;;  %1029 = vst.msk [vmem:[#allocation2] sm:$0x1] %vm1028_vm0, %v1379_v25  ;;  %v1255_v61 = vrot.slane %v1243_v52, 1 }
  0xfc   :  { %1030 = vst.msk [vmem:[#allocation2 + $0x23] sm:$0x1] %vm1028_vm0, %v1379_v25 }
  0xfd   :  { %1201 = vmatpush.msra.mxu3 %v1352_v35  ;;  %v1258_v19 = vsel %vm58_vm1, %v1255_v61, %v1257_v27 }
  0xff   :  { %1202 = vmatpush.msra.mxu3 %v1351_v49 }
 0x101   :  { %1203 = vmatpush.msra.mxu3 %v1350_v17 }
 0x14b   :  { %v695_v14 = vpop.f32.mrf.mxu1 }
 0x151   :  { %v575_v58 = vpop.f32.mrf.mxu3 }
 0x152   :  { %v725_v26 = vpop.f32.mrf.mxu2 }
 0x153   :  { %v509_v46 = vpop.f32.mrf.mxu0 }
 0x154   :  { %v576_v11 = vadd.f32 %v575_v58, %v509_v46  ;;  %v1330_v58 = vld [vmem:[%s2163_s6 + $0x48] sm:$0xff] }
 0x155   :  { %v868_v47 = vpop.f32.mrf.mxu1  ;;  %1095 = vmatpush.msrb.mxu1 %v1330_v58 }
 0x159   :  { %v615_v3 = vpop.f32.mrf.mxu3 }
 0x15a   :  { %v616_v22 = vadd.f32 %v615_v3, %v576_v11  ;;  %v1349_v3 = vld [vmem:[%s2163_s6 + $0x90] sm:$0xff] }
 0x15b   :  { %v647_v1 = vpop.f32.mrf.mxu0  ;;  %v900_v7 = vpop.f32.mrf.mxu2  ;;  %1204 = vmatpush.msra.mxu3 %v1349_v3 }
 0x15c   :  { %v648_v28 = vadd.f32 %v647_v1, %v616_v22  ;;  %v1041_v1 = vld [vmem:[%s2163_s6] sm:$0xff] }
 0x15d   :  { %1142 = vmatpush.msrb.mxu2 %v1041_v1 }
 0x15e   :  { %v696_v41 = vadd.f32 %v695_v14, %v648_v28 }
 0x160   :  { %v726_v59 = vadd.f32 %v725_v26, %v696_v41  ;;  %v986_v26 = vld [vmem:[%s2164_s4] sm:$0x1] }
 0x162   :  { %v1987_v15 = vmul.f32 0.001953125, %v726_v59 }
 0x163   :  { %v762_v37 = vpop.f32.mrf.mxu3 }
 0x164   :  { %v983_v9 = vmul.f32 %v1987_v15, %v1987_v15 }
 0x165   :  { %v828_v33 = vpop.f32.mrf.mxu0 }
 0x166   :  { %v829_v44 = vadd.f32 %v828_v33, %v762_v37 }
 0x168   :  { %v869_v42 = vadd.f32 %v868_v47, %v829_v44  ;;  %v999_v44 = vld [vmem:[%s2165_s5] sm:$0x1] }
 0x16a   :  { %v901_v8 = vadd.f32 %v900_v7, %v869_v42 }
 0x175   :  { %v948_v10 = vpop.f32.mrf.mxu3 }
 0x176   :  { %v949_v24 = vadd.f32 %v948_v10, %v901_v8 }
 0x177   :  { %v978_v29 = vpop.f32.mrf.mxu0 }
 0x178   :  { %v979_v30 = vadd.f32 %v978_v29, %v949_v24 }
 0x17a   :  { %v982_v32 = vmul.f32 0.001953125, %v979_v30 }
 0x17c   :  { %v984_v23 = vsub.f32 %v982_v32, %v983_v9 }
 0x17e   :  { %v985_v2 = vmax.f32 %v984_v23, 0.0 }
 0x180   :  { %v987_v31 = vadd.f32 1e-05, %v985_v2  ;;  %v1241_v2 = vmax.f32 %v1374_v0, 0.0 }
 0x182   :  { %1371 = vrsqrt.f32 %v987_v31  ;;  %vm994_vm5 = vweird.f32 %v987_v31  ;;  %v1251_v50 = vrot.slane %v1241_v2, 1 }
 0x188   :  { %v1372_v16 = vpop.eup %1371 }
 0x189   :  { %v989_v46 = vmul.f32 %v1372_v16, %v987_v31  ;;  %vm995_vm4 = vweird.f32 %v1372_v16  ;;  %v1375_v31 = vld [vmem:[%s2160_s0 + $0x10] sm:$0xff] }
 0x18a   :  { %vm996_vm7 = vmor %vm994_vm5, %vm995_vm4  ;;  %v1242_v43 = vmax.f32 %v1375_v31, 0.0 }
 0x18b   :  { %v990_v11 = vmul.f32 %v1372_v16, %v989_v46 }
 0x18c   :  { %v1253_v48 = vrot.slane %v1242_v43, 1 }
 0x18d   :  { %v991_v14 = vmul.f32 0.5, %v990_v11 }
 0x18e   :  { %v1254_v35 = vsel %vm58_vm1, %v1251_v50, %v1253_v48  ;;  %v1256_v25 = vsel %vm58_vm1, %v1253_v48, %v1255_v61  ;;  %v1268_v61 = vpop.permute.xlu2 %1267 }
 0x18f   :  { %v992_v22 = vsub.f32 1.5, %v991_v14  ;;  %1263 = vrot.lane.b32.xlu1 %v1256_v25, %s1380_s28 }
 0x191   :  { %v993_v33 = vmul.f32 %v1372_v16, %v992_v22 }
 0x193   :  { %v997_v28 = vsel %vm996_vm7, %v1372_v16, %v993_v33 }
 0x194   :  { %v998_v37 = vmul.f32 %v997_v28, %v986_v26 }
 0x196   :  { %v1000_v41 = vmul.f32 %v998_v37, %v1987_v15  ;;  %v1003_v47 = vperm.slane %v998_v37, 0  ;;  %v1370_v37 = vld [vmem:[%s2166_s7] ss:$0 sm:$0xff] }
 0x197   :  { %1265 = vrot.lane.b32.xlu1 %v1258_v19, %s1380_s28 }
 0x198   :  { %v1001_v42 = vsub.f32 %v999_v44, %v1000_v41  ;;  %v1005_v59 = vmul.f32 %v1003_v47, %v1903_v20  ;;  %v1006_v7 = vmul.f32 %v1003_v47, %v1893_v53  ;;  %v1007_v8 = vmul.f32 %v1003_v47, %v1907_v21 }
 0x199   :  { %v1008_v10 = vmul.f32 %v1003_v47, %v1915_v5  ;;  %v1009_v29 = vmul.f32 %v1003_v47, %v1942_v54  ;;  %v1373_v54 = vld [vmem:[%s2160_s0] sm:$0xff] }
 0x19a   :  { %v1011_v24 = vperm.slane %v1001_v42, 0  ;;  %v1240_v34 = vmax.f32 %v1373_v54, 0.0 }
 0x19c   :  { %v1013_v30 = vadd.f32 %v1011_v24, %v1005_v59  ;;  %v1014_v32 = vadd.f32 %v1011_v24, %v1006_v7  ;;  %v1015_v9 = vadd.f32 %v1011_v24, %v1007_v8  ;;  %v1016_v57 = vadd.f32 %v1011_v24, %v1008_v10 }
 0x19d   :  { %v1017_v18 = vadd.f32 %v1011_v24, %v1009_v29  ;;  %v1250_v6 = vrot.slane %v1240_v34, 1 }
 0x19e   :  { %v1018_v55 = vmax.f32 %v1013_v30, 0.0  ;;  %v1019_v15 = vmax.f32 %v1014_v32, 0.0  ;;  %v1020_v23 = vmax.f32 %v1015_v9, 0.0  ;;  %v1021_v51 = vmax.f32 %v1016_v57, 0.0 }
 0x19f   :  { %v1022_v13 = vmax.f32 %v1017_v18, 0.0  ;;  %v1252_v36 = vsel %vm58_vm1, %v1250_v6, %v1251_v50  ;;  %vm1284_vm1 = vcmask 523264  }
 0x1a0   :  { %v1023_v53 = vsel %vm1877_vm6, %v1018_v55, 0.0  ;;  %v1024_v20 = vsel %vm1871_vm3, %v1019_v15, 0.0  ;;  %v1025_v21 = vsel %vm1887_vm9, %v1020_v23, 0.0  ;;  %v1026_v5 = vsel %vm1897_vm11, %v1021_v51, 0.0  ;;  %1259 = vrot.lane.b32.xlu0 %v1252_v36, %s1380_s28 }
 0x1a1   :  { %1031 = vst.msk [vmem:[#allocation2 + $0x1] sm:$0xff] %vm68_vm2, %v1023_v53  ;;  %v1027_v38 = vsel %vm1934_vm14, %v1022_v13, 0.0  ;;  %vm1291_vm3 = vcmask 517120  }
 0x1a2   :  { %1032 = vst.msk [vmem:[#allocation2 + $0x9] sm:$0xff] %vm68_vm2, %v1024_v20 }
 0x1a3   :  { %1033 = vst.msk [vmem:[#allocation2 + $0x11] sm:$0xff] %vm68_vm2, %v1025_v21 }
 0x1a4   :  { %1034 = vst.msk [vmem:[#allocation2 + $0x19] sm:$0xff] %vm68_vm2, %v1026_v5 }
 0x1a5   :  { %1035 = vst.msk [vmem:[#allocation2 + $0x21] sm:$0x3] %vm437_vm15, %v1027_v38 }
 0x1a8   :  { %v1050_v39 = vld [vmem:[#allocation2 + $0x1] sm:$0xff]  ;;  %1261 = vrot.lane.b32.xlu0 %v1254_v35, %s1380_s28 }
 0x1a9   :  { %v1036_v40 = vld [vmem:[#allocation2] sm:$0xff]  ;;  %1339 = vmatmul.msk.f32.vlgmr.msrb.gmra.mxu1 %vm68_vm2, %v1050_v39  ;;  %v1051_v63 = vld [vmem:[#allocation2 + $0x9] sm:$0xff] }
 0x1aa   :  { %1344 = vmatmul.msk.f32.vlgmr.msrb.gmra.mxu2 %vm68_vm2, %v1036_v40  ;;  %v1159_v62 = vld [vmem:[#allocation2 + $0x2] sm:$0xff]  ;;  %v1160_v49 = vld [vmem:[#allocation2 + $0xa] sm:$0xff] }
 0x1ab   :  { %1358 = vmatmul.msk.f32.vlgmr.msra.gmra.mxu3 %vm68_vm2, %v1159_v62  ;;  %v1037_v4 = vld [vmem:[#allocation2 + $0x8] sm:$0xff]  ;;  %v1052_v60 = vld [vmem:[#allocation2 + $0x11] sm:$0xff]  ;;  %v1053_v46 = vld [vmem:[#allocation2 + $0x19] sm:$0xff] }
 0x1ac   :  { %v1038_v16 = vld [vmem:[#allocation2 + $0x10] sm:$0xff]  ;;  %v1039_v58 = vld [vmem:[#allocation2 + $0x18] sm:$0xff]  ;;  %v1054_v3 = vld [vmem:[#allocation2 + $0x21] sm:$0x3] }
 0x1ad   :  { %v1161_v17 = vld [vmem:[#allocation2 + $0x12] sm:$0xff]  ;;  %v1162_v1 = vld [vmem:[#allocation2 + $0x1a] sm:$0xff]  ;;  %v1163_v14 = vld [vmem:[#allocation2 + $0x22] sm:$0x3] }
 0x1ae   :  { %v1040_v11 = vld [vmem:[#allocation2 + $0x20] sm:$0x3] }
 0x1b1   :  { %1340 = vmatmul.msk.f32.gmra.mxu1 %vm68_vm2, %v1051_v63 }
 0x1b2   :  { %1345 = vmatmul.msk.f32.gmra.mxu2 %vm68_vm2, %v1037_v4 }
 0x1b3   :  { %1359 = vmatmul.msk.f32.gmra.mxu3 %vm68_vm2, %v1160_v49 }
 0x1b9   :  { %1341 = vmatmul.msk.f32.gmra.mxu1 %vm68_vm2, %v1052_v60 }
 0x1ba   :  { %1346 = vmatmul.msk.f32.gmra.mxu2 %vm68_vm2, %v1038_v16 }
 0x1bb   :  { %1360 = vmatmul.msk.f32.gmra.mxu3 %vm68_vm2, %v1161_v17 }
 0x1c1   :  { %1342 = vmatmul.msk.f32.gmra.mxu1 %vm68_vm2, %v1053_v46 }
 0x1c2   :  { %1347 = vmatmul.msk.f32.gmra.mxu2 %vm68_vm2, %v1039_v58 }
 0x1c3   :  { %1361 = vmatmul.msk.f32.gmra.mxu3 %vm68_vm2, %v1162_v1 }
 0x1c9   :  { %1343 = vmatmul.msk.f32.gmra.mxu1 %vm68_vm2, %v1054_v3 }
 0x1ca   :  { %1348 = vmatmul.msk.f32.gmra.mxu2 %vm68_vm2, %v1040_v11 }
 0x1cb   :  { %1362 = vmatmul.msk.f32.gmra.mxu3 %vm68_vm2, %v1163_v14  ;;  %vm1288_vm2 = vcmask 523266  }
 0x201   :  { %v1264_v20 = vpop.permute.xlu1 %1263 }
 0x209   :  { %v1266_v39 = vpop.permute.xlu1 %1265 }
 0x212   :  { %v1260_v47 = vpop.permute.xlu0 %1259 }
 0x21a   :  { %v1262_v57 = vpop.permute.xlu0 %1261 }
 0x226   :  { %v1097_v22 = vpop.f32.mrf.mxu1 }
 0x22d   :  { %v1144_v26 = vpop.f32.mrf.mxu2 }
 0x22e   :  { %v1145_v33 = vadd.f32 %v1144_v26, %v1097_v22  ;;  %v1206_v28 = vpop.f32.mrf.mxu3  ;;  %v1100_v44 = vpop.f32.mrf.mxu1 }
 0x230   :  { %v1221_v41 = vadd.f32 %v1206_v28, %v1145_v33 }
 0x232   :  { %v1230_v42 = vadd.f32 %v1370_v37, %v1221_v41 }
 0x234   :  { %v1235_v59 = vmax.f32 %v1230_v42, 0.0 }
 0x235   :  { %v1147_v7 = vpop.f32.mrf.mxu2 }
 0x236   :  { %v1274_v8 = vadd.f32 %v1260_v47, %v1235_v59  ;;  %v1148_v10 = vadd.f32 %v1147_v7, %v1100_v44  ;;  %v1209_v24 = vpop.f32.mrf.mxu3  ;;  %v1103_v32 = vpop.f32.mrf.mxu1 }
 0x238   :  { %v1279_v29 = vmax.f32 %v1274_v8, 0.0  ;;  %v1222_v30 = vadd.f32 %v1209_v24, %v1148_v10 }
 0x23a   :  { %1285 = vst.msk [vmem:[%s2167_s8] sm:$0xff] %vm1284_vm1, %v1279_v29  ;;  %v1231_v9 = vadd.f32 %v1370_v37, %v1222_v30 }
 0x23c   :  { %v1236_v18 = vmax.f32 %v1231_v9, 0.0 }
 0x23d   :  { %v1150_v55 = vpop.f32.mrf.mxu2 }
 0x23e   :  { %v1275_v15 = vadd.f32 %v1262_v57, %v1236_v18  ;;  %v1151_v23 = vadd.f32 %v1150_v55, %v1103_v32  ;;  %v1212_v51 = vpop.f32.mrf.mxu3  ;;  %v1106_v5 = vpop.f32.mrf.mxu1 }
 0x240   :  { %v1280_v13 = vmax.f32 %v1275_v15, 0.0  ;;  %v1223_v53 = vadd.f32 %v1212_v51, %v1151_v23 }
 0x242   :  { %1286 = vst.msk [vmem:[%s2167_s8 + $0x8] sm:$0xff] %vm1284_vm1, %v1280_v13  ;;  %v1232_v21 = vadd.f32 %v1370_v37, %v1223_v53 }
 0x244   :  { %v1237_v54 = vmax.f32 %v1232_v21, 0.0 }
 0x245   :  { %v1153_v34 = vpop.f32.mrf.mxu2 }
 0x246   :  { %v1276_v0 = vadd.f32 %v1264_v20, %v1237_v54  ;;  %v1154_v2 = vadd.f32 %v1153_v34, %v1106_v5  ;;  %v1215_v38 = vpop.f32.mrf.mxu3  ;;  %v1109_v62 = vpop.f32.mrf.mxu1 }
 0x248   :  { %v1281_v6 = vmax.f32 %v1276_v0, 0.0  ;;  %v1224_v50 = vadd.f32 %v1215_v38, %v1154_v2 }
 0x24a   :  { %1363 = vst.msk [vmem:[%s2167_s8 + $0xe] sm:$0xfc] %vm1288_vm2, %v1281_v6  ;;  %v1233_v36 = vadd.f32 %v1370_v37, %v1224_v50 }
 0x24c   :  { %v1238_v40 = vmax.f32 %v1233_v36, 0.0 }
 0x24d   :  { %v1156_v31 = vpop.f32.mrf.mxu2 }
 0x24e   :  { %v1277_v43 = vadd.f32 %v1266_v39, %v1238_v40  ;;  %v1157_v45 = vadd.f32 %v1156_v31, %v1109_v62  ;;  %v1218_v52 = vpop.f32.mrf.mxu3 }
 0x250   :  { %v1282_v12 = vmax.f32 %v1277_v43, 0.0  ;;  %v1225_v56 = vadd.f32 %v1218_v52, %v1157_v45 }
 0x252   :  { %1364 = vst.msk [vmem:[%s2167_s8 + $0x16] sm:$0xff] %vm1284_vm1, %v1282_v12  ;;  %v1234_v48 = vadd.f32 %v1370_v37, %v1225_v56 }
 0x254   :  { %v1239_v27 = vmax.f32 %v1234_v48, 0.0 }
 0x256   :  { %v1278_v35 = vadd.f32 %v1268_v61, %v1239_v27 }
 0x258   :  { %v1283_v25 = vmax.f32 %v1278_v35, 0.0 }
 0x25a   :  { %1365 = vst.msk [vmem:[%s2167_s8 + $0x1e] sm:$0x3] %vm1291_vm3, %v1283_v25 }

</bundles_post_ra>
